<compile_context>
chip_gen: v7x
topology: tpu7x:2x2x1
jax: 0.10.0
libtpu: 0.0.40
codegen_flags: <defaults>
</compile_context>

<pallas_src>
import functools

import jax
import jax.numpy as jnp
import numpy as np
from jax.experimental import pallas as pl
from jax.experimental.pallas import tpu as pltpu


# ----------------------------------------------------------------------------
# Fused "gaussian head" Pallas kernel
# ----------------------------------------------------------------------------

def _gaussian_head_kernel(feat_ref, uv1_ref, coef_ref, wmat_ref, wbias_ref,
                          feat_out_ref, gauss_ref, *, scale):
    """Block shapes:
         feat_ref  (1, Cin, P)    pooled backbone features (channels on sublanes)
         uv1_ref   (3, P)         rows: u (width), v (height), 1
         coef_ref  (1, 3D, 3)     per-camera affine coeffs, rows = [x-bins, y-bins, z-bins]
         wmat_ref  (E+D+1, Cin)   stacked neck weights [w_feat; w_depth; w_opacity]
         wbias_ref (E+D+1, 1)     stacked neck biases
         feat_out_ref (1, E, P)
         gauss_ref    (1, 16, P)  rows 0-2 mean, 3-8 cov6 [xx,xy,xz,yy,yz,zz],
                                  row 9 opacity, rows 10-15 zero padding
    """
    f = feat_ref[0]                       # (Cin, P)
    P = f.shape[-1]
    E = feat_out_ref.shape[1]
    D = coef_ref.shape[1] // 3

    # ---- stacked neck 1x1 conv as a single MXU matmul (bias added on VPU) ----
    head = jnp.dot(wmat_ref[...], f,
                   preferred_element_type=jnp.float32,
                   precision=jax.lax.Precision.HIGHEST) + wbias_ref[...]
    feats = head[:E]                                   # (E, P)
    logits = head[E:E + D]                             # (D, P)
    opac = jax.nn.sigmoid(head[E + D:E + D + 1])       # (1, P)

    feat_out_ref[0] = feats                            # full-block unmasked store

    # ---- 3D pixel coordinates on the MXU: coef_rows(3D,3) @ [u; v; 1](3,P) ----
    cxyz = jnp.dot(coef_ref[0], uv1_ref[...],
                   preferred_element_type=jnp.float32,
                   precision=jax.lax.Precision.HIGHEST)  # (3D, P)
    cx = cxyz[0 * D:1 * D]
    cy = cxyz[1 * D:2 * D]
    cz = cxyz[2 * D:3 * D]

    # ---- depth softmax with deferred normalization + mean + covariance ----
    m = jnp.max(logits, axis=0, keepdims=True)
    e = jnp.exp(logits - m)                            # unnormalized probs (D, P)
    s = jnp.sum(e, axis=0, keepdims=True)              # (1, P)
    inv = pl.reciprocal(s, approx=True)                # EUP slot (nearly idle)
    inv = inv * (2.0 - s * inv)                        # Newton refinements on (1,P):
    inv = inv * (2.0 - s * inv)                        # restores ~f32 accuracy, cheap

    mx = jnp.sum(e * cx, axis=0, keepdims=True) * inv
    my = jnp.sum(e * cy, axis=0, keepdims=True) * inv
    mz = jnp.sum(e * cz, axis=0, keepdims=True) * inv

    dx = mx - cx
    dy = my - cy
    dz = mz - cz
    ex = e * dx                                        # weighted residuals, reused
    ey = e * dy
    ez = e * dz
    sinv = inv * scale

    # Assemble the packed output block in-register (sublane packing on the XLU),
    # then issue one unmasked full-block store.
    packed = jnp.concatenate([
        mx, my, mz,
        jnp.sum(ex * dx, axis=0, keepdims=True) * sinv,
        jnp.sum(ex * dy, axis=0, keepdims=True) * sinv,
        jnp.sum(ex * dz, axis=0, keepdims=True) * sinv,
        jnp.sum(ey * dy, axis=0, keepdims=True) * sinv,
        jnp.sum(ey * dz, axis=0, keepdims=True) * sinv,
        jnp.sum(ez * dz, axis=0, keepdims=True) * sinv,
        opac,
        jnp.zeros((6, P), jnp.float32),
    ], axis=0)                                         # (16, P)
    gauss_ref[0] = packed


def _pick_tiles(hw, max_tile=1024):
    """Choose a 128-multiple pixel tile and step count; padding handled by the wrapper.
    max_tile kept modest (<=1024) to limit live (D, tile) temporaries / vreg spills and
    to let the t axis shard across v7x's two TensorCores even at small BN."""
    p128 = pl.cdiv(hw, 128) * 128
    steps = pl.cdiv(hw, min(max_tile, p128))
    tile = pl.cdiv(pl.cdiv(hw, steps), 128) * 128
    return tile, steps


def gaussian_head_pallas(feat_flat, uv, coef_rows, w_feat, w_dep, w_op, *, scale,
                         max_tile=1024):
    """feat_flat (BN, Cin, HW), uv (2, HW), coef_rows (BN, 3*D, 3), w_* (rows, Cin+1).
    Returns features (BN, E, HW) and packed gaussians (BN, 16, HW) in float32."""
    BN, Cin, HW = feat_flat.shape
    D3 = coef_rows.shape[1]
    E = w_feat.shape[0]
    D = w_dep.shape[0]
    assert D3 == 3 * D

    # Stack the three neck heads into one weight matrix (one MXU matmul in-kernel).
    w_all = jnp.concatenate([w_feat, w_dep, w_op], axis=0)      # (E+D+1, Cin+1)
    w_mat = w_all[:, :Cin]                                       # (R, Cin)
    w_bias = w_all[:, Cin:Cin + 1]                               # (R, 1)
    R = E + D + 1

    # Augment uv with a ones row so coords are a single bias-free matmul.
    uv1 = jnp.concatenate([uv, jnp.ones((1, HW), jnp.float32)], axis=0)  # (3, HW)

    tile_p, steps = _pick_tiles(HW, max_tile)
    P = tile_p * steps
    if P != HW:  # pad pixels to a lane-aligned multiple of tile_p (no tail masking)
        feat_flat = jnp.pad(feat_flat, ((0, 0), (0, 0), (0, P - HW)))
        uv1 = jnp.pad(uv1, ((0, 0), (0, P - HW)))

    kern = functools.partial(_gaussian_head_kernel, scale=scale)
    feats, gauss = pl.pallas_call(
        kern,
        out_shape=(jax.ShapeDtypeStruct((BN, E, P), jnp.float32),
                   jax.ShapeDtypeStruct((BN, 16, P), jnp.float32)),
        grid_spec=pltpu.PrefetchScalarGridSpec(
            num_scalar_prefetch=0,
            grid=(BN, steps),
            in_specs=[
                pl.BlockSpec((1, Cin, tile_p), lambda b, t: (b, 0, t)),
                pl.BlockSpec((3, tile_p), lambda b, t: (0, t)),
                pl.BlockSpec((1, 3 * D, 3), lambda b, t: (b, 0, 0)),
                pl.BlockSpec((R, Cin), lambda b, t: (0, 0)),
                pl.BlockSpec((R, 1), lambda b, t: (0, 0)),
            ],
            out_specs=[
                pl.BlockSpec((1, E, tile_p), lambda b, t: (b, 0, t)),
                pl.BlockSpec((1, 16, tile_p), lambda b, t: (b, 0, t)),
            ],
        ),
        compiler_params=pltpu.CompilerParams(
            dimension_semantics=("parallel", "parallel"),
            vmem_limit_bytes=32 * 1024 * 1024),
    )(feat_flat, uv1, coef_rows, w_mat, w_bias)
    return feats[..., :HW], gauss[..., :HW]


# ----------------------------------------------------------------------------
# Plain-JAX glue (matches torch reference semantics)
# ----------------------------------------------------------------------------

IMAGENET_MEAN = jnp.array([0.485, 0.456, 0.406], jnp.float32).reshape(1, 3, 1, 1)
IMAGENET_STD = jnp.array([0.229, 0.224, 0.225], jnp.float32).reshape(1, 3, 1, 1)


def get_bin_centers(depth_max, depth_start, depth_num):
    interval = (depth_max - depth_start) / depth_num
    edges = depth_start + interval * jnp.arange(depth_num + 1, dtype=jnp.float32)
    return 0.5 * (edges[:-1] + edges[1:])                         # (D,)


def make_pixel_uv(Hf, Wf, img_h, img_w):
    """(2, Hf*Wf) image-plane coords for flat pixel index p = h*Wf + w."""
    coords_h = jnp.linspace(0.0, 1.0, Hf, dtype=jnp.float32) * img_h
    coords_w = jnp.linspace(0.0, 1.0, Wf, dtype=jnp.float32) * img_w
    u = jnp.broadcast_to(coords_w[None, :], (Hf, Wf)).reshape(-1)
    v = jnp.broadcast_to(coords_h[:, None], (Hf, Wf)).reshape(-1)
    return jnp.stack([u, v], axis=0)


def make_coord_coefs(lidar2img, depth_num, depth_start=1.0, depth_max=61.0):
    """Affine coefficients so that coord_i(d, u, v) = A_i[d]*u + B_i[d]*v + C_i[d];
    mirrors get_pixel_coords_3d with img2lidar folded in.
    Returns rows laid out for the in-kernel MXU matmul: (B*N, 3*D, 3) where rows
    0..D-1 are x-coeffs per bin, D..2D-1 y, 2D..3D-1 z and columns are (A, B, C)."""
    eps = 1e-5
    B, N = lidar2img.shape[:2]
    centers = get_bin_centers(depth_max, depth_start, depth_num)  # (D,)
    zc = jnp.maximum(centers, eps)
    M = jnp.linalg.inv(lidar2img).reshape(B * N, 4, 4)[:, :3, :]  # (BN, 3, 4)
    A = M[:, :, 0][:, :, None] * zc[None, None, :]                # (BN, 3, D)
    Bm = M[:, :, 1][:, :, None] * zc[None, None, :]
    C = M[:, :, 2][:, :, None] * centers[None, None, :] + M[:, :, 3][:, :, None]
    coef = jnp.stack([A, Bm, C], axis=-1)                         # (BN, 3, D, 3)
    return coef.reshape(B * N, 3 * depth_num, 3)


def gaussian_lss_forward(params, image, lidar2img, cfg):
    b, n, C, H, W = image.shape
    x = image.reshape(b * n, C, H, W)
    x = (x - IMAGENET_MEAN) / IMAGENET_STD                        # Normalize()

    # TODO(synk): backbone / neck / head are unspecified external submodules of
    # GaussianLSS; stand-ins: backbone = s x s average pool, neck = shared 1x1 conv
    # fused into the Pallas gaussian-head kernel below.
    s = cfg["pool"]
    Hf, Wf = H // s, W // s
    feat = x.reshape(b * n, C, Hf, s, Wf, s).mean(axis=(3, 5))    # (BN, C, Hf, Wf)

    BN, HW = b * n, Hf * Wf
    D, E = cfg["depth_num"], cfg["embed_dims"]

    uv = make_pixel_uv(Hf, Wf, cfg["img_h"], cfg["img_w"])        # (2, HW)
    coef = make_coord_coefs(lidar2img, D)                         # (BN, 3D, 3)
    scale = cfg["error_tolerance"] ** 2 / 9.0

    feats, gauss = gaussian_head_pallas(
        feat.reshape(BN, C, HW), uv, coef,
        params["neck_w_feat"], params["neck_w_depth"], params["neck_w_op"],
        scale=scale)
    # gauss rows: 0-2 mean, 3-8 cov6 [xx,xy,xz,yy,yz,zz], 9 opacity

    # NOTE: these transposes are only needed to match the reference's
    # `b (n h w) d` mid_output layout; a downstream consumer that accepts the
    # kernel's channels-first (BN, rows, HW) layout avoids an extra HBM pass.
    means3D = gauss[:, 0:3].transpose(0, 2, 1).reshape(b, n * HW, 3)
    cov3D = gauss[:, 3:9].transpose(0, 2, 1).reshape(b, n * HW, 6)
    opac_g = gauss[:, 9:10].transpose(0, 2, 1).reshape(b, n * HW, 1)
    feats_g = feats.transpose(0, 2, 1).reshape(b, n * HW, E)

    # ---- GaussianRenderer masking / num_gaussians ----
    pc = (-50.0, -50.0, -4.0, 50.0, 50.0, 4.0)
    mask_pos = ((means3D[..., 0] >= pc[0]) & (means3D[..., 0] <= pc[3]) &
                (means3D[..., 1] >= pc[1]) & (means3D[..., 1] <= pc[4]) &
                (means3D[..., 2] >= pc[2]) & (means3D[..., 2] <= pc[5]))
    mask = (opac_g[..., 0] > cfg["opacity_filter"]) & mask_pos
    num_gaussians = mask.astype(jnp.float32).sum(axis=1).mean()

    # TODO(synk): GaussianRasterizer (CUDA 3D-Gaussian splatting), the renderer's
    # conv1/BasicBlock/UpsamplingAdd BEV refinement and the external decoder/head have
    # no clean Pallas equivalent / are unspecified external submodules.
    return {
        "mid_output": {"features": feats_g, "mean": means3D,
                       "uncertainty": cov3D, "opacities": opac_g},
        "num_gaussians": num_gaussians,
    }


# ----------------------------------------------------------------------------
# Pure-JAX references for the self-test
# ----------------------------------------------------------------------------

def gaussian_head_ref(feat_flat, uv, coef_rows, w_feat, w_dep, w_op, scale):
    BN, Cin, HW = feat_flat.shape
    D = coef_rows.shape[1] // 3

    def conv(w):  # explicit broadcast-sum in full f32
        return (jnp.sum(w[None, :, :Cin, None] * feat_flat[:, None, :, :], axis=2)
                + w[None, :, Cin:])

    feats = conv(w_feat)
    logits = conv(w_dep)
    opac = jax.nn.sigmoid(conv(w_op))

    coef3 = coef_rows.reshape(BN, 3, D, 3)
    u = uv[0][None, None, :]
    v = uv[1][None, None, :]
    cx = coef3[:, 0, :, 0:1] * u + coef3[:, 0, :, 1:2] * v + coef3[:, 0, :, 2:3]
    cy = coef3[:, 1, :, 0:1] * u + coef3[:, 1, :, 1:2] * v + coef3[:, 1, :, 2:3]
    cz = coef3[:, 2, :, 0:1] * u + coef3[:, 2, :, 1:2] * v + coef3[:, 2, :, 2:3]

    p = jax.nn.softmax(logits, axis=1)
    mx = jnp.sum(p * cx, axis=1, keepdims=True)
    my = jnp.sum(p * cy, axis=1, keepdims=True)
    mz = jnp.sum(p * cz, axis=1, keepdims=True)
    dx, dy, dz = mx - cx, my - cy, mz - cz
    cov6 = jnp.concatenate([
        jnp.sum(p * dx * dx, axis=1, keepdims=True),
        jnp.sum(p * dx * dy, axis=1, keepdims=True),
        jnp.sum(p * dx * dz, axis=1, keepdims=True),
        jnp.sum(p * dy * dy, axis=1, keepdims=True),
        jnp.sum(p * dy * dz, axis=1, keepdims=True),
        jnp.sum(p * dz * dz, axis=1, keepdims=True),
    ], axis=1) * scale
    mean = jnp.concatenate([mx, my, mz], axis=1)
    return feats, mean, cov6, opac


def coords3d_direct_ref(lidar2img, Hf, Wf, img_h, img_w, depth_num,
                        depth_start=1.0, depth_max=61.0):
    """Direct port of get_pixel_coords_3d, rearranged to (BN, D, H*W, 3)."""
    eps = 1e-5
    coords_h = jnp.linspace(0.0, 1.0, Hf, dtype=jnp.float32) * img_h
    coords_w = jnp.linspace(0.0, 1.0, Wf, dtype=jnp.float32) * img_w
    centers = get_bin_centers(depth_max, depth_start, depth_num)
    cw, ch, cd = jnp.meshgrid(coords_w, coords_h, centers, indexing="ij")  # (W,H,D)
    zc = jnp.maximum(cd, eps)
    pts = jnp.stack([cw * zc, ch * zc, cd, jnp.ones_like(cd)], axis=-1)    # (W,H,D,4)
    M = jnp.linalg.inv(lidar2img)                                           # (B,N,4,4)
    c3d = jnp.einsum("bnij,whdj->bnwhdi", M, pts)[..., :3]                  # (B,N,W,H,D,3)
    B, N = lidar2img.shape[:2]
    return c3d.transpose(0, 1, 4, 3, 2, 5).reshape(B * N, depth_num, Hf * Wf, 3)


# ----------------------------------------------------------------------------
# Main
# ----------------------------------------------------------------------------

if __name__ == "__main__":
    key = jax.random.PRNGKey(0)
    b, n = 2, 2
    C, H, W = 3, 32, 64
    cfg = dict(embed_dims=32, depth_num=16, img_h=32, img_w=64, pool=4,
               error_tolerance=1.0, opacity_filter=0.05)

    k1, k2, k3, k4, k5 = jax.random.split(key, 5)
    image = jax.random.uniform(k1, (b, n, C, H, W), dtype=jnp.float32)

    # Plausible, invertible lidar2img = intrinsics @ extrinsics (identity R, small t).
    fx, fy = float(cfg["img_w"]), float(cfg["img_h"])
    K = jnp.array([[fx, 0.0, cfg["img_w"] / 2.0, 0.0],
                   [0.0, fy, cfg["img_h"] / 2.0, 0.0],
                   [0.0, 0.0, 1.0, 0.0],
                   [0.0, 0.0, 0.0, 1.0]], dtype=jnp.float32)
    trans = 0.5 * jax.random.normal(k2, (b, n, 3), dtype=jnp.float32)
    Ext = jnp.tile(jnp.eye(4, dtype=jnp.float32), (b, n, 1, 1))
    Ext = Ext.at[..., :3, 3].set(trans)
    lidar2img = jnp.einsum("ij,bnjk->bnik", K, Ext)

    E, D = cfg["embed_dims"], cfg["depth_num"]
    params = {
        "neck_w_feat": 0.1 * jax.random.normal(k3, (E, C + 1), dtype=jnp.float32),
        "neck_w_depth": 0.1 * jax.random.normal(k4, (D, C + 1), dtype=jnp.float32),
        "neck_w_op": 0.1 * jax.random.normal(k5, (1, C + 1), dtype=jnp.float32),
    }

    fwd = jax.jit(lambda p, img, l2i: gaussian_lss_forward(p, img, l2i, cfg))
    out = fwd(params, image, lidar2img)
    jax.block_until_ready(out)

    # ---- self-test 1: affine-coefficient coords == direct get_pixel_coords_3d ----
    Hf, Wf = H // cfg["pool"], W // cfg["pool"]
    uv = make_pixel_uv(Hf, Wf, cfg["img_h"], cfg["img_w"])
    coef = make_coord_coefs(lidar2img, D)                          # (BN, 3D, 3)
    c_direct = coords3d_direct_ref(lidar2img, Hf, Wf, cfg["img_h"], cfg["img_w"], D)
    coef3 = coef.reshape(b * n, 3, D, 3)
    u3, v3 = uv[0][None, None, :], uv[1][None, None, :]
    c_aff = (coef3[..., 0:1] * uv[0][None, None, None, :]
             + coef3[..., 1:2] * uv[1][None, None, None, :]
             + coef3[..., 2:3])                                    # (BN, 3, D, HW)
    c_aff = c_aff.transpose(0, 2, 3, 1)                            # (BN, D, HW, 3)
    np.testing.assert_allclose(np.asarray(c_aff), np.asarray(c_direct),
                               atol=1e-3, rtol=1e-4)

    # ---- self-test 2: fused Pallas head vs pure-JAX reference ----
    xn = (image.reshape(b * n, C, H, W) - IMAGENET_MEAN) / IMAGENET_STD
    feat = xn.reshape(b * n, C, Hf, cfg["pool"], Wf, cfg["pool"]).mean(axis=(3, 5))
    feat_flat = feat.reshape(b * n, C, Hf * Wf)
    scale = cfg["error_tolerance"] ** 2 / 9.0
    feats_k, gauss_k = gaussian_head_pallas(
        feat_flat, uv, coef, params["neck_w_feat"], params["neck_w_depth"],
        params["neck_w_op"], scale=scale)
    feats_r, mean_r, cov6_r, opac_r = gaussian_head_ref(
        feat_flat, uv, coef, params["neck_w_feat"], params["neck_w_depth"],
        params["neck_w_op"], scale)
    np.testing.assert_allclose(np.asarray(feats_k), np.asarray(feats_r),
                               atol=1e-3, rtol=1e-3)
    np.testing.assert_allclose(np.asarray(gauss_k[:, 0:3]), np.asarray(mean_r),
                               atol=2e-3, rtol=1e-3)
    np.testing.assert_allclose(np.asarray(gauss_k[:, 3:9]), np.asarray(cov6_r),
                               atol=2e-3, rtol=1e-3)
    np.testing.assert_allclose(np.asarray(gauss_k[:, 9:10]), np.asarray(opac_r),
                               atol=1e-4, rtol=1e-4)

    print("KERNEL_OK")
</pallas_src>

<mosaic_0001>
module attributes {stable_mosaic.version = 11 : i64} {
  func.func @_gaussian_head_kernel(%arg0: i32, %arg1: i32, %arg2: memref<1x3x128xf32, #tpu.memory_space<vmem>>, %arg3: memref<3x128xf32, #tpu.memory_space<vmem>>, %arg4: memref<1x48x3xf32, #tpu.memory_space<vmem>>, %arg5: memref<49x3xf32, #tpu.memory_space<vmem>>, %arg6: memref<49x1xf32, #tpu.memory_space<vmem>>, %arg7: memref<1x32x128xf32, #tpu.memory_space<vmem>>, %arg8: memref<1x16x128xf32, #tpu.memory_space<vmem>>) attributes {dimension_semantics = [#tpu.dimension_semantics<parallel>, #tpu.dimension_semantics<parallel>], iteration_bounds = array<i64: 4, 1>, scalar_prefetch = 0 : i64, scratch_operands = 0 : i64, tpu.core_type = #tpu.core_type<tc>, window_params = [{transform_indices = @transform_0, window_bounds = array<i64: 1, 3, 128>}, {transform_indices = @transform_1, window_bounds = array<i64: 3, 128>}, {transform_indices = @transform_2, window_bounds = array<i64: 1, 48, 3>}, {pipeline_mode = #tpu.pipeline_mode<synchronous>, transform_indices = @transform_3, window_bounds = array<i64: 49, 3>}, {pipeline_mode = #tpu.pipeline_mode<synchronous>, transform_indices = @transform_4, window_bounds = array<i64: 49, 1>}, {transform_indices = @transform_5, window_bounds = array<i64: 1, 32, 128>}, {transform_indices = @transform_6, window_bounds = array<i64: 1, 16, 128>}]} {
    %c0 = arith.constant 0 : index
    %c0_0 = arith.constant 0 : index
    %c0_1 = arith.constant 0 : index
    %0 = vector.load %arg2[%c0, %c0_0, %c0_1] : memref<1x3x128xf32, #tpu.memory_space<vmem>>, vector<1x3x128xf32>
    %1 = vector.shape_cast %0 : vector<1x3x128xf32> to vector<3x128xf32>
    %c0_2 = arith.constant 0 : index
    %c0_3 = arith.constant 0 : index
    %2 = vector.load %arg5[%c0_2, %c0_3] : memref<49x3xf32, #tpu.memory_space<vmem>>, vector<49x3xf32>
    %cst = arith.constant dense<0.000000e+00> : vector<49x128xf32>
    %3 = tpu.matmul %2, %1, %cst {dimension_numbers = #tpu.dot_dimension_numbers<[1], [0], [0], [1], [0, 0, 1, 1], [], []>, precision = #tpu.contract_precision<fp32>} : vector<49x3xf32>, vector<3x128xf32>, vector<49x128xf32> -> vector<49x128xf32>
    %c0_4 = arith.constant 0 : index
    %c0_5 = arith.constant 0 : index
    %4 = vector.load %arg6[%c0_4, %c0_5] : memref<49x1xf32, #tpu.memory_space<vmem>>, vector<49x1xf32>
    %5 = vector.broadcast %4 : vector<49x1xf32> to vector<49x128xf32>
    %6 = arith.addf %3, %5 : vector<49x128xf32>
    %7 = vector.extract_strided_slice %6 {offsets = [0, 0], sizes = [32, 128], strides = [1, 1]} : vector<49x128xf32> to vector<32x128xf32>
    %8 = vector.extract_strided_slice %6 {offsets = [32, 0], sizes = [16, 128], strides = [1, 1]} : vector<49x128xf32> to vector<16x128xf32>
    %9 = vector.extract_strided_slice %6 {offsets = [48, 0], sizes = [1, 128], strides = [1, 1]} : vector<49x128xf32> to vector<1x128xf32>
    %10 = arith.negf %9 : vector<1x128xf32>
    %11 = math.exp %10 : vector<1x128xf32>
    %cst_6 = arith.constant 1.000000e+00 : f32
    %12 = vector.broadcast %cst_6 : f32 to vector<1x128xf32>
    %13 = arith.addf %12, %11 : vector<1x128xf32>
    %14 = arith.divf %12, %13 : vector<1x128xf32>
    %c0_7 = arith.constant 0 : index
    %c0_8 = arith.constant 0 : index
    %c0_9 = arith.constant 0 : index
    %15 = vector.load %arg7[%c0_7, %c0_8, %c0_9] : memref<1x32x128xf32, #tpu.memory_space<vmem>>, vector<1x32x128xf32>
    %16 = vector.shape_cast %15 : vector<1x32x128xf32> to vector<32x128xf32>
    %17 = vector.shape_cast %7 : vector<32x128xf32> to vector<1x32x128xf32>
    tpu.vector_store %arg7[%c0_7, %c0_8, %c0_9], %17 {strides = array<i32>} : memref<1x32x128xf32, #tpu.memory_space<vmem>>, vector<1x32x128xf32>,
    %c0_10 = arith.constant 0 : index
    %c0_11 = arith.constant 0 : index
    %c0_12 = arith.constant 0 : index
    %18 = vector.load %arg4[%c0_10, %c0_11, %c0_12] : memref<1x48x3xf32, #tpu.memory_space<vmem>>, vector<1x48x3xf32>
    %19 = vector.shape_cast %18 : vector<1x48x3xf32> to vector<48x3xf32>
    %c0_13 = arith.constant 0 : index
    %c0_14 = arith.constant 0 : index
    %20 = vector.load %arg3[%c0_13, %c0_14] : memref<3x128xf32, #tpu.memory_space<vmem>>, vector<3x128xf32>
    %cst_15 = arith.constant dense<0.000000e+00> : vector<48x128xf32>
    %21 = tpu.matmul %19, %20, %cst_15 {dimension_numbers = #tpu.dot_dimension_numbers<[1], [0], [0], [1], [0, 0, 1, 1], [], []>, precision = #tpu.contract_precision<fp32>} : vector<48x3xf32>, vector<3x128xf32>, vector<48x128xf32> -> vector<48x128xf32>
    %22 = vector.extract_strided_slice %21 {offsets = [0, 0], sizes = [16, 128], strides = [1, 1]} : vector<48x128xf32> to vector<16x128xf32>
    %23 = vector.extract_strided_slice %21 {offsets = [16, 0], sizes = [16, 128], strides = [1, 1]} : vector<48x128xf32> to vector<16x128xf32>
    %24 = vector.extract_strided_slice %21 {offsets = [32, 0], sizes = [16, 128], strides = [1, 1]} : vector<48x128xf32> to vector<16x128xf32>
    %cst_16 = arith.constant dense<0xFF800000> : vector<128xf32>
    %25 = vector.multi_reduction <maximumf>, %8, %cst_16 [0] : vector<16x128xf32> to vector<128xf32>
    %26 = vector.shape_cast %25 : vector<128xf32> to vector<1x128xf32>
    %27 = vector.broadcast %26 : vector<1x128xf32> to vector<16x128xf32>
    %28 = arith.subf %8, %27 : vector<16x128xf32>
    %29 = math.exp %28 : vector<16x128xf32>
    %cst_17 = arith.constant dense<0.000000e+00> : vector<128xf32>
    %30 = vector.multi_reduction <add>, %29, %cst_17 [0] : vector<16x128xf32> to vector<128xf32>
    %31 = vector.shape_cast %30 : vector<128xf32> to vector<1x128xf32>
    %32 = tpu.reciprocal %31 {approx = true} : vector<1x128xf32> -> vector<1x128xf32>
    %33 = arith.mulf %31, %32 : vector<1x128xf32>
    %cst_18 = arith.constant 2.000000e+00 : f32
    %34 = vector.broadcast %cst_18 : f32 to vector<1x128xf32>
    %35 = arith.subf %34, %33 : vector<1x128xf32>
    %36 = arith.mulf %32, %35 : vector<1x128xf32>
    %37 = arith.mulf %31, %36 : vector<1x128xf32>
    %cst_19 = arith.constant 2.000000e+00 : f32
    %38 = vector.broadcast %cst_19 : f32 to vector<1x128xf32>
    %39 = arith.subf %38, %37 : vector<1x128xf32>
    %40 = arith.mulf %36, %39 : vector<1x128xf32>
    %41 = arith.mulf %29, %22 : vector<16x128xf32>
    %cst_20 = arith.constant dense<0.000000e+00> : vector<128xf32>
    %42 = vector.multi_reduction <add>, %41, %cst_20 [0] : vector<16x128xf32> to vector<128xf32>
    %43 = vector.shape_cast %42 : vector<128xf32> to vector<1x128xf32>
    %44 = arith.mulf %43, %40 : vector<1x128xf32>
    %45 = arith.mulf %29, %23 : vector<16x128xf32>
    %cst_21 = arith.constant dense<0.000000e+00> : vector<128xf32>
    %46 = vector.multi_reduction <add>, %45, %cst_21 [0] : vector<16x128xf32> to vector<128xf32>
    %47 = vector.shape_cast %46 : vector<128xf32> to vector<1x128xf32>
    %48 = arith.mulf %47, %40 : vector<1x128xf32>
    %49 = arith.mulf %29, %24 : vector<16x128xf32>
    %cst_22 = arith.constant dense<0.000000e+00> : vector<128xf32>
    %50 = vector.multi_reduction <add>, %49, %cst_22 [0] : vector<16x128xf32> to vector<128xf32>
    %51 = vector.shape_cast %50 : vector<128xf32> to vector<1x128xf32>
    %52 = arith.mulf %51, %40 : vector<1x128xf32>
    %53 = vector.broadcast %44 : vector<1x128xf32> to vector<16x128xf32>
    %54 = arith.subf %53, %22 : vector<16x128xf32>
    %55 = vector.broadcast %48 : vector<1x128xf32> to vector<16x128xf32>
    %56 = arith.subf %55, %23 : vector<16x128xf32>
    %57 = vector.broadcast %52 : vector<1x128xf32> to vector<16x128xf32>
    %58 = arith.subf %57, %24 : vector<16x128xf32>
    %59 = arith.mulf %29, %54 : vector<16x128xf32>
    %60 = arith.mulf %29, %56 : vector<16x128xf32>
    %61 = arith.mulf %29, %58 : vector<16x128xf32>
    %cst_23 = arith.constant 0.111111112 : f32
    %62 = vector.broadcast %cst_23 : f32 to vector<1x128xf32>
    %63 = arith.mulf %40, %62 : vector<1x128xf32>
    %64 = arith.mulf %59, %54 : vector<16x128xf32>
    %cst_24 = arith.constant dense<0.000000e+00> : vector<128xf32>
    %65 = vector.multi_reduction <add>, %64, %cst_24 [0] : vector<16x128xf32> to vector<128xf32>
    %66 = vector.shape_cast %65 : vector<128xf32> to vector<1x128xf32>
    %67 = arith.mulf %66, %63 : vector<1x128xf32>
    %68 = arith.mulf %59, %56 : vector<16x128xf32>
    %cst_25 = arith.constant dense<0.000000e+00> : vector<128xf32>
    %69 = vector.multi_reduction <add>, %68, %cst_25 [0] : vector<16x128xf32> to vector<128xf32>
    %70 = vector.shape_cast %69 : vector<128xf32> to vector<1x128xf32>
    %71 = arith.mulf %70, %63 : vector<1x128xf32>
    %72 = arith.mulf %59, %58 : vector<16x128xf32>
    %cst_26 = arith.constant dense<0.000000e+00> : vector<128xf32>
    %73 = vector.multi_reduction <add>, %72, %cst_26 [0] : vector<16x128xf32> to vector<128xf32>
    %74 = vector.shape_cast %73 : vector<128xf32> to vector<1x128xf32>
    %75 = arith.mulf %74, %63 : vector<1x128xf32>
    %76 = arith.mulf %60, %56 : vector<16x128xf32>
    %cst_27 = arith.constant dense<0.000000e+00> : vector<128xf32>
    %77 = vector.multi_reduction <add>, %76, %cst_27 [0] : vector<16x128xf32> to vector<128xf32>
    %78 = vector.shape_cast %77 : vector<128xf32> to vector<1x128xf32>
    %79 = arith.mulf %78, %63 : vector<1x128xf32>
    %80 = arith.mulf %60, %58 : vector<16x128xf32>
    %cst_28 = arith.constant dense<0.000000e+00> : vector<128xf32>
    %81 = vector.multi_reduction <add>, %80, %cst_28 [0] : vector<16x128xf32> to vector<128xf32>
    %82 = vector.shape_cast %81 : vector<128xf32> to vector<1x128xf32>
    %83 = arith.mulf %82, %63 : vector<1x128xf32>
    %84 = arith.mulf %61, %58 : vector<16x128xf32>
    %cst_29 = arith.constant dense<0.000000e+00> : vector<128xf32>
    %85 = vector.multi_reduction <add>, %84, %cst_29 [0] : vector<16x128xf32> to vector<128xf32>
    %86 = vector.shape_cast %85 : vector<128xf32> to vector<1x128xf32>
    %87 = arith.mulf %86, %63 : vector<1x128xf32>
    %cst_30 = arith.constant 0.000000e+00 : f32
    %88 = vector.broadcast %cst_30 : f32 to vector<6x128xf32>
    %89 = tpu.concatenate %44, %48, %52, %67, %71, %75, %79, %83, %87, %14, %88 in 0 : vector<1x128xf32>, vector<1x128xf32>, vector<1x128xf32>, vector<1x128xf32>, vector<1x128xf32>, vector<1x128xf32>, vector<1x128xf32>, vector<1x128xf32>, vector<1x128xf32>, vector<1x128xf32>, vector<6x128xf32> -> vector<16x128xf32>
    %c0_31 = arith.constant 0 : index
    %c0_32 = arith.constant 0 : index
    %c0_33 = arith.constant 0 : index
    %90 = vector.load %arg8[%c0_31, %c0_32, %c0_33] : memref<1x16x128xf32, #tpu.memory_space<vmem>>, vector<1x16x128xf32>
    %91 = vector.shape_cast %90 : vector<1x16x128xf32> to vector<16x128xf32>
    %92 = vector.shape_cast %89 : vector<16x128xf32> to vector<1x16x128xf32>
    tpu.vector_store %arg8[%c0_31, %c0_32, %c0_33], %92 {strides = array<i32>} : memref<1x16x128xf32, #tpu.memory_space<vmem>>, vector<1x16x128xf32>,
    return
  }
  func.func @transform_0(%arg0: i32, %arg1: i32) -> (i32, i32, i32) {
    %c0_i32 = arith.constant 0 : i32
    %c0_i32_0 = arith.constant 0 : i32
    return %arg0, %c0_i32, %arg1 : i32, i32, i32
  }
  func.func @transform_1(%arg0: i32, %arg1: i32) -> (i32, i32) {
    %c0_i32 = arith.constant 0 : i32
    %c0_i32_0 = arith.constant 0 : i32
    return %c0_i32, %arg1 : i32, i32
  }
  func.func @transform_2(%arg0: i32, %arg1: i32) -> (i32, i32, i32) {
    %c0_i32 = arith.constant 0 : i32
    %c0_i32_0 = arith.constant 0 : i32
    %c0_i32_1 = arith.constant 0 : i32
    return %arg0, %c0_i32, %c0_i32_0 : i32, i32, i32
  }
  func.func @transform_3(%arg0: i32, %arg1: i32) -> (i32, i32) {
    %c0_i32 = arith.constant 0 : i32
    %c0_i32_0 = arith.constant 0 : i32
    %c0_i32_1 = arith.constant 0 : i32
    return %c0_i32, %c0_i32_0 : i32, i32
  }
  func.func @transform_4(%arg0: i32, %arg1: i32) -> (i32, i32) {
    %c0_i32 = arith.constant 0 : i32
    %c0_i32_0 = arith.constant 0 : i32
    %c0_i32_1 = arith.constant 0 : i32
    return %c0_i32, %c0_i32_0 : i32, i32
  }
  func.func @transform_5(%arg0: i32, %arg1: i32) -> (i32, i32, i32) {
    %c0_i32 = arith.constant 0 : i32
    %c0_i32_0 = arith.constant 0 : i32
    return %arg0, %c0_i32, %arg1 : i32, i32, i32
  }
  func.func @transform_6(%arg0: i32, %arg1: i32) -> (i32, i32, i32) {
    %c0_i32 = arith.constant 0 : i32
    %c0_i32_0 = arith.constant 0 : i32
    return %arg0, %c0_i32, %arg1 : i32, i32, i32
  }
}

</mosaic_0001>

<bundles_post_ra>
// kernel: custom-call.11
= control target key start
LH: loop header
LB: loop body
LE: loop exit
PB: predicated region body
PF: predicated region fallthrough
CT: control target
= control target key end

     0   :  { %s1082_s0 = inlined_call_operand.hbm [shape: f32[2,2,4,4], index: 0, kind: input, shape index: {}]   ;;  %s1083_s1 = inlined_call_operand.vmem [shape: f32[2,2,4,4], index: 1, kind: output, shape index: {0}]   ;;  %s1084_s2 = inlined_call_operand.hbm [shape: s32[2,2,4], index: 2, kind: output, shape index: {1}]   ;;  %s1085_s3 = inlined_call_operand.vmem [shape: s32[2,2,4], index: 3, kind: output, shape index: {2}]  }
   0x1   :  { %1088 = sst [smem:[#allocation14_spill]] %s1082_s0 }
   0x2   :  { %5 = vsyncpa [#allocation2], 0 }
   0x3   :  { %7 = vsyncpa [#allocation2 + $0x1], 0 }
   0x4   :  { %8 = vsyncpa [#allocation3], 0 }
   0x5   :  { %10 = vsyncpa [#allocation3 + $0x1], 0  ;;  %s841_s12 = smov 0   ;;  %s843_s13 = smov 0  }
   0x6   :  { %s845_s14 = smov 0   ;;  %s847_s15 = smov 0  }
   0x7   :  { %s849_s16 = smov 0   ;;  %s851_s17 = smov 0  }
   0x8   :  { %s853_s18 = smov 0   ;;  %s855_s19 = smov 0  }
   0x9 LB: > { %s575_s20 = sadd.s32 4294967295, %s812_s19   ;;  %s576_s21 = sadd.s32 4294967294, %s812_s19   ;;  %s812_s19 = sphi %s855_s19, %s16_s19   ;;  %s808_s18 = sphi %s853_s18, %s1105_s18   ;;  %s804_s17 = sphi %s851_s17, %s1104_s17   ;;  %s800_s16 = sphi %s849_s16, %s1103_s16   ;;  %s796_s15 = sphi %s847_s15, %s1102_s15   ;;  %s792_s14 = sphi %s845_s14, %s1101_s14   ;;  %s788_s13 = sphi %s843_s13, %s1100_s13   ;;  %s784_s12 = sphi %s841_s12, %s1099_s12  }
   0xa   : > { %s25_s22 = sadd.s32 1, %s804_s17  ;;  %s28_s23 = sadd.s32 1, %s808_s18 }
   0xb   : > { %p26_p0 = scmp.ge.s32.totalorder %s25_s22, 2  ;;  %s32_s24 = sshrl.u32 %s804_s17, 3 }
   0xc   : > { %s39_s25 = sadd.s32 1, %s792_s14  ;;  %p49_p1 = scmp.ne.s32.totalorder %s792_s14, %s788_s13 }
   0xd   : > { %s1107_s22 = smov (%p26_p0, %s25_s22), 0  ;;  %s1109_s23 = smov (!%p26_p0, %s28_s23), %s808_s18 }
   0xe   : > { %s33_s26 = sshrl.u32 %s1107_s22, 3  ;;  %p50_p2 = scmp.eq.s32.totalorder %s575_s20, 3 }
   0xf   : > { %p30_p3 = scmp.ge.s32.totalorder %s1109_s23, 2  ;;  %s35_s27 = ssub.s32 %s32_s24, %s33_s26 }
  0x10   : > { %p895_p4 = por %p50_p2, %p49_p1  ;;  %p55_p5 = scmp.ne.s32.totalorder %s788_s13, %s784_s12 }
  0x11   : > { %s1111_s23 = smov (%p30_p3, %s1109_s23), 0  ;;  %p56_p6 = scmp.eq.s32.totalorder %s576_s21, 3 }
  0x12   : > { %1090 = sst [smem:[#allocation13_spill]] %s1111_s23  ;;  %s34_s29 = ssub.s32 %s808_s18, %s1111_s23 }
  0x13   : > { %p607_p7 = scmp.lt.s32.totalorder %s812_s19, 4  ;;  %s36_s30 = sor.u32 %s35_s27, %s34_s29 }
  0x14   : > { %p906_p8 = por %p56_p6, %p55_p5  ;;  %p37_p9 = scmp.eq.s32.totalorder %s36_s30, 0 }
  0x15   : > { %s103_s5 = sand.u32 1, %s812_s19   ;;  %s580_s8 = sshll.u32 %s808_s18, 1 }
  0x16   : > { %s1091_s4 = scalar_select %p906_p8, 1, 0 }
  0x17   : > { %s579_s6 = sshll.u32 %s103_s5, 2  ;;  %s112_s9 = sadd.s32 %s804_s17, %s580_s8 }
  0x18   : > { %s912_s7 = scalar_select %p37_p9, %s792_s14, %s39_s25  }
  0x19   : > { %s107_s10 = scalar_lea.vmem [#allocation1], %s579_s6  ;;  %s581_s24 = sshll.u32 %s112_s9, 6 }
  0x1a   : > { %s116_s11 = sshll.u32 %s107_s10, 4  ;;  %s1092_s0 = sld [smem:[#allocation14_spill]]  ;;  %s916_s11 = int_to_ptr.vmem [resolvable:$true] %s116_s11 }
  0x1b   : > { %s104_s29 = scalar_lea.sflag [#allocation2], %s103_s5 }
  0x20   : > { %s921_s27 = scalar_lea.hbm %s1092_s0, %s581_s24  ;;  %s688_s8 = scalar_lea.hbm %s1092_s0, 256 }
  0x21   : > { %s684_s25 = scalar_lea.hbm %s921_s27, 64  ;;  %p689_p0 = scmp.lt.u32.totalorder %s921_s27, %s1092_s0 }
  0x22   : > { %p685_p11 = scmp.ne.s32.totalorder %s921_s27, %s684_s25  ;;  %p690_p1 = scmp.lt.u32.totalorder %s688_s8, %s684_s25 }
  0x23   : > { %p692_p3 = scmp.lt.u32.totalorder %s684_s25, %s921_s27 }
  0x24   : > { %p686_p12 = pnand %p685_p11, %p607_p7  ;;  %p691_p2 = por %p690_p1, %p689_p0 }
  0x26   : > { %p687_p13 = pneg %p686_p12  ;;  %p693_p5 = por %p692_p3, %p691_p2 }
  0x28   : > { %p694_p6 = pnand %p693_p5, %p687_p13 }
  0x2a   : > { %697 = shalt.err (!%p694_p6)
}
  0x2b   : > { %s698_s5 = scalar_lea.vmem %s916_s11, 64  ;;  %s818_s24 = smov [#allocation1]  }
  0x2c   : > { %p699_p9 = scmp.ne.s32.totalorder %s916_s11, %s698_s5  ;;  %s702_s21 = sshll.u32 %s818_s24, 4  ;;  %s703_s21 = int_to_ptr.vmem [resolvable:$false] %s702_s21 }
  0x2d   : > { %s704_s26 = scalar_lea.vmem %s703_s21, 128  ;;  %p705_p10 = scmp.lt.s32.totalorder %s916_s11, %s703_s21 }
  0x2e   : > { %p700_p11 = pnand %p699_p9, %p607_p7  ;;  %p706_p8 = scmp.lt.s32.totalorder %s704_s26, %s698_s5 }
  0x30   : > { %p701_p12 = pneg %p700_p11  ;;  %p707_p0 = por %p706_p8, %p705_p10 }
  0x32   : > { %p708_p1 = pnand %p707_p0, %p701_p12 }
  0x34   : > { %711 = shalt.err (!%p708_p1)
}
  0x35   : > { %600 = dma.hbm_to_vmem [thread:$0]  (%p607_p7), %s921_s27, 64, %s916_s11, %s104_s29  }
  0x36   : > { %p121_p13 = scmp.lt.s32.totalorder %s812_s19, 5  ;;  %p1093_p2 = scmp.ge.s32.totalorder %s812_s19, 1 }
  0x38   : > { %p122_p3 = pnand %p1093_p2, %p121_p13 }
  0x3a   : > { %125 = sbr.rel (%p122_p3) target bundleno = 493 (0x1ed), region = 20 }
  0x41   : > { %s127_s25 = sand.u32 1, %s575_s20  }
  0x42   : > { %s128_s30 = scalar_lea.sflag [#allocation2], %s127_s25 }
  0x43   : > { %776 = dma.done.wait %s128_s30, 64  }
  0x44   : > { %777 = vsyncadd %s128_s30, 4294967232  ;;  %s583_s6 = sshll.u32 %s127_s25, 2  ;;  %s163_s8 = sand.u32 7, %s796_s15   ;;  %v168_v0 = vlaneseq  ;;  %v819_v2 = vmov 0  }
  0x45   : > { %s954_s11 = scalar_lea.vmem [#allocation6], %s163_s8  ;;  %s1086_s27 = sand.u32 1, %s788_s13  }
  0x46   : > { %v952_v1 = vshrl.u32 %v168_v0, 7  ;;  %167 = vst [vmem:[%s954_s11] sm:$0x1] %v819_v2  ;;  %s961_s20 = sshll.u32 %s1086_s27, 1  ;;  %s137_s29 = scalar_lea.vmem [#allocation1], %s583_s6 }
  0x47   : > { %v157_v3 = vld [vmem:[%s137_s29] sm:$0xf]  ;;  %s963_s9 = scalar_lea.vmem [#allocation5], %s583_s6  ;;  %s148_s10 = scalar_lea.vmem [#allocation7], %s961_s20 }
  0x48   : > { %172 = vst [vmem:[#allocation10] sm:$0xff] %v952_v1  ;;  %158 = vst [vmem:[#allocation0] sm:$0xf] %v157_v3  ;;  %s967_s24 = scalar_lea.vmem [#allocation8], %s163_s8  ;;  %s969_s21 = smov 0  }
  0x4f   : > { %v161_v4 = vld [vmem:[#allocation0] sm:$0xff] }
  0x50   : > { %162 = vst [vmem:[#allocation4] sm:$0xff] %v161_v4 }
  0x51 LB: >> { %vm188_vm0 = vcmp.lt.s32.totalorder %v952_v1, 4  ;;  %v976_v7 = vstv %s816_s21  ;;  %s229_s26 = ssub.s32 128, %s816_s21  ;;  %v235_v37 = vand.u32 127, %v168_v0  ;;  %v238_v39 = vld [vmem:[%s954_s11] ss:$0 sm:$0xff]  ;;  %s241_s25 = scalar_lea.vmem [#allocation4], %s816_s21  ;;  %s816_s21 = sphi %s969_s21, %s178_s21  }
  0x52   : >> { %vm187_vm1 = vcmp.ge.s32.totalorder %v952_v1, %v976_v7  ;;  %s247_s6 = scalar_lea.vmem [#allocation10], %s816_s21  ;;  %vm267_vm15 = vcmp.gt.s32.totalorder %v952_v1, %v976_v7  ;;  %s178_s21 = sadd.s32 1, %s816_s21  }
  0x53   : >> { %vm189_vm3 = vmand %vm187_vm1, %vm188_vm0  ;;  %vm259_vm12 = vcmp.gt.s32.totalorder %v235_v37, %v976_v7  ;;  %vm236_vm13 = vcmp.eq.s32.totalorder %v235_v37, %v976_v7  ;;  %v249_v41 = vld [vmem:[%s247_s6] ss:$0 sm:$0xff]  ;;  %p175_p7 = scmp.ge.s32.totalorder %s178_s21, 4  }
  0x54   : >> { %vm271_vm1 = vmand %vm267_vm15, %vm236_vm13 }
  0x57   : >> { %v183_v5 = vld [vmem:[#allocation4] sm:$0xff]  ;;  %v243_v40 = vld [vmem:[%s241_s25] ss:$0 sm:$0xff] }
  0x58   : >> { %v184_v6 = vand.u32 2147483647, %v183_v5 }
  0x5a   : >> { %vm587_vm2 = vcmp.gt.f32.partialorder %v184_v6, -inf }
  0x5b   : >> { %vm191_vm4 = vmand %vm189_vm3, %vm587_vm2 }
  0x5c   : >> { %v192_v8 = vsel %vm191_vm4, %v952_v1, %v976_v7  ;;  %v193_v9 = vsel %vm191_vm4, %v184_v6, -inf }
  0x5d   : >> { %v194_v10 = vrot.slane %v193_v9, 1  ;;  %v195_v11 = vrot.slane %v192_v8, 1 }
  0x5f   : >> { %vm196_vm5 = vcmp.ge.f32.partialorder %v194_v10, %v193_v9  ;;  %v199_v12 = vrot.slane %v194_v10, 1  ;;  %v200_v13 = vrot.slane %v195_v11, 1 }
  0x60   : >> { %v197_v14 = vsel %vm196_vm5, %v194_v10, %v193_v9  ;;  %v198_v15 = vsel %vm196_vm5, %v195_v11, %v192_v8 }
  0x61   : >> { %vm201_vm6 = vcmp.ge.f32.partialorder %v199_v12, %v197_v14  ;;  %v204_v16 = vrot.slane %v199_v12, 1  ;;  %v205_v17 = vrot.slane %v200_v13, 1 }
  0x62   : >> { %v202_v18 = vsel %vm201_vm6, %v199_v12, %v197_v14  ;;  %v203_v19 = vsel %vm201_vm6, %v200_v13, %v198_v15 }
  0x63   : >> { %vm206_vm7 = vcmp.ge.f32.partialorder %v204_v16, %v202_v18  ;;  %v209_v20 = vrot.slane %v204_v16, 1  ;;  %v210_v21 = vrot.slane %v205_v17, 1 }
  0x64   : >> { %v207_v22 = vsel %vm206_vm7, %v204_v16, %v202_v18  ;;  %v208_v23 = vsel %vm206_vm7, %v205_v17, %v203_v19 }
  0x65   : >> { %vm211_vm8 = vcmp.ge.f32.partialorder %v209_v20, %v207_v22  ;;  %v214_v24 = vrot.slane %v209_v20, 1  ;;  %v215_v25 = vrot.slane %v210_v21, 1 }
  0x66   : >> { %v212_v26 = vsel %vm211_vm8, %v209_v20, %v207_v22  ;;  %v213_v27 = vsel %vm211_vm8, %v210_v21, %v208_v23 }
  0x67   : >> { %vm216_vm9 = vcmp.ge.f32.partialorder %v214_v24, %v212_v26  ;;  %v219_v28 = vrot.slane %v214_v24, 1  ;;  %v220_v29 = vrot.slane %v215_v25, 1 }
  0x68   : >> { %v217_v30 = vsel %vm216_vm9, %v214_v24, %v212_v26  ;;  %v218_v31 = vsel %vm216_vm9, %v215_v25, %v213_v27 }
  0x69   : >> { %vm221_vm10 = vcmp.ge.f32.partialorder %v219_v28, %v217_v30  ;;  %v224_v32 = vrot.slane %v219_v28, 1  ;;  %v225_v33 = vrot.slane %v220_v29, 1 }
  0x6a   : >> { %v222_v34 = vsel %vm221_vm10, %v219_v28, %v217_v30  ;;  %v223_v35 = vsel %vm221_vm10, %v220_v29, %v218_v31 }
  0x6b   : >> { %vm226_vm11 = vcmp.ge.f32.partialorder %v224_v32, %v222_v34 }
  0x6c   : >> { %v228_v36 = vsel %vm226_vm11, %v225_v33, %v223_v35 }
  0x6d   : >> { %230 = vrot.lane.b32.xlu0 %v228_v36, %s229_s26  ;;  %s591_s26 = sshll.u32 (%p175_p7), %s800_s16, 1 }
  0xdf   : >> { %v231_v38 = vpop.permute.xlu0 %230 }
  0xe0   : >> { %597 = vpush %v231_v38 }
 0x111   : >> { %s598_s30 = spop %597 }
 0x112   : >> { %v237_v42 = vstv %s598_s30  ;;  %s242_s8 = scalar_lea.vmem [#allocation4], %s598_s30  ;;  %s248_s29 = scalar_lea.vmem [#allocation10], %s598_s30 }
 0x113   : >> { %v244_v43 = vld [vmem:[%s242_s8] ss:$0 sm:$0xff]  ;;  %v239_v45 = vsel %vm236_vm13, %v237_v42, %v238_v39  ;;  %s359_s30 = sadd.s32 (%p175_p7), %s796_s15, %s591_s26 }
 0x114   : >> { %v250_v44 = vld [vmem:[%s248_s29] ss:$0 sm:$0xff]  ;;  %245 = vst [vmem:[%s242_s8] sm:$0x1] %v243_v40  ;;  %vm253_vm14 = vcmp.ne.f32.partialorder %v244_v43, 0.0  ;;  %240 = vst [vmem:[%s954_s11] sm:$0x1] %v239_v45  ;;  %v260_v52 = vsel %vm259_vm12, %v244_v43, 0.0 }
 0x115   : >> { %251 = vst [vmem:[%s248_s29] sm:$0x1] %v249_v41  ;;  %246 = vst [vmem:[%s241_s25] sm:$0x1] %v244_v43  ;;  %s396_s25 = sshrl.u32 (%p175_p7), %s796_s15, 3  ;;  %s592_s11 = sshll.u32 (%p175_p7), %s359_s30, 2 }
 0x116   : >> { %252 = vst [vmem:[%s247_s6] sm:$0x1] %v250_v44  ;;  %vm254_vm0 = vmand %vm236_vm13, %vm253_vm14  ;;  %s1008_s6 = sadd.s32 (%p175_p7), %s800_s16, %s396_s25  ;;  %s361_s5 = scalar_lea.vmem (%p175_p7), %s1083_s1, %s592_s11 }
 0x117   : >> { %v255_v46 = vsel %vm254_vm0, %v244_v43, 1.0  ;;  %s593_s21 = sshll.u32 (%p175_p7), %s1008_s6, 5  ;;  %s404_s15 = sshll.u32 (%p175_p7), %s148_s10, 4  ;;  %s405_s15 = int_to_ptr.vmem [resolvable:$true] %s404_s15 }
 0x118   : >> { %v268_v47 = vsel %vm267_vm15, %v255_v46, 1.0  ;;  %s1020_s23 = scalar_lea.hbm (%p175_p7), %s1084_s2, %s593_s21  ;;  %s1094_s16 = sand.u32 (%p175_p7), 1, %s788_s13  }
 0x119   : >> { %682 = vrcp.f32 %v268_v47  ;;  %s350_s26 = scalar_lea.sflag (%p175_p7), [#allocation3], %s1094_s16  ;;  %s712_s25 = scalar_lea.vmem (%p175_p7), %s405_s15, 32 }
 0x11a   : > { %p713_p8 = scmp.ne.s32.totalorder (%p175_p7), %s405_s15, %s712_s25  ;;  %s820_s30 = smov (%p175_p7), [#allocation7]  }
 0x11b   : > { %v336_v58 = vld [vmem:[#allocation6] sm:$0x3] (%p175_p7)  ;;  %s716_s8 = sshll.u32 (%p175_p7), %s820_s30, 4  ;;  %s717_s8 = int_to_ptr.vmem [resolvable:$false] %s716_s8 }
 0x11c   : >> { %v264_v49 = vld [vmem:[#allocation4] sm:$0xff]  ;;  %338 = vst [vmem:[%s148_s10] sm:$0x3] (%p175_p7), %v336_v58  ;;  %p714_p10 = pnand (%p175_p7), %p713_p8, %p895_p4  ;;  %p719_p6 = scmp.lt.s32.totalorder (%p175_p7), %s405_s15, %s717_s8 }
 0x11d   : > { %v278_v56 = vld [vmem:[#allocation10] sm:$0xff] (%p175_p7) }
 0x11e   : > { %p715_p5 = pneg (%p175_p7), %p714_p10 }
 0x123   : >> { %v683_v48 = vpop.eup %682 }
 0x124   : >> { %v270_v50 = vmul.f32 %v683_v48, %v264_v49 }
 0x126   : >> { %v272_v51 = vsel %vm271_vm1, %v270_v50, 0.0 }
 0x127   : >> { %273 = vadd.xlane.f32.xlu0 %v272_v51 }
 0x154   : > { %294 = vxpose.xlu0.b32.start.end [1/1] (short) (narrow) (%p175_p7), %v278_v56, 8 }
 0x1b3   : > { %177 = sbr.rel (!%p175_p7) target bundleno = 81 (0x51), region = 173 }
 0x1b4   : >> { %v274_v53 = vpop.xlane.xlu0 %273 }
 0x1b5   : >> { %v275_v54 = vmul.f32 %v274_v53, %v260_v52 }
 0x1b7   : >> { %v276_v55 = vsub.f32 %v270_v50, %v275_v54 }
 0x1b9   : >> { %277 = vst [vmem:[#allocation4] sm:$0xff] %v276_v55 }
 0x1c0   : > { %v330_v57 = vld [vmem:[#allocation4] sm:$0xf] }
 0x1c1   : > { %332 = vst [vmem:[%s963_s9] sm:$0xf] %v330_v57 }
 0x1c8   : > { %v377_v59 = vld [vmem:[%s963_s9] sm:$0xf]  ;;  %s718_s9 = scalar_lea.vmem %s717_s8, 64 }
 0x1c9   : > { %378 = vst [vmem:[%s361_s5] sm:$0xf] %v377_v59  ;;  %p720_p9 = scmp.lt.s32.totalorder %s718_s9, %s712_s25 }
 0x1cb   : > { %p721_p11 = por %p720_p9, %p719_p6 }
 0x1cd   : > { %p722_p12 = pnand %p721_p11, %p715_p5 }
 0x1cf   : > { %725 = shalt.err (!%p722_p12)
}
 0x1d0   : > { %s726_s0 = scalar_lea.hbm %s1020_s23, 32  ;;  %s730_s5 = scalar_lea.hbm %s1084_s2, 64 }
 0x1d1   : > { %p727_p0 = scmp.ne.s32.totalorder %s1020_s23, %s726_s0  ;;  %p731_p2 = scmp.lt.u32.totalorder %s1020_s23, %s1084_s2 }
 0x1d2   : > { %p732_p3 = scmp.lt.u32.totalorder %s730_s5, %s726_s0  ;;  %p734_p8 = scmp.lt.u32.totalorder %s726_s0, %s1020_s23 }
 0x1d3   : > { %p728_p1 = pnand %p727_p0, %p895_p4 }
 0x1d4   : > { %p733_p7 = por %p732_p3, %p731_p2 }
 0x1d5   : > { %p729_p13 = pneg %p728_p1 }
 0x1d6   : > { %p735_p10 = por %p734_p8, %p733_p7 }
 0x1d8   : > { %p736_p5 = pnand %p735_p10, %p729_p13 }
 0x1da   : > { %739 = shalt.err (!%p736_p5)
}
 0x1db   : > { %601 = dma.vmem_to_hbm [thread:$0]  (%p895_p4), %s405_s15, 32, %s1020_s23, %s350_s26   ;;  %v310_v60 = vpop.trf.xlu0 }
 0x1dc   : > { %326 = vst [vmem:[%s967_s24] sm:$0x1] %v310_v60  ;;  %s1095_s29 = scalar_lea.vmem [#allocation9], %s961_s20  ;;  %s594_s16 = sshll.u32 (%p895_p4), %s1008_s6, 1 }
 0x1dd   : > { %s1096_s25 = scalar_lea.vmem (%p895_p4), [#allocation9], %s961_s20  ;;  %s414_s9 = scalar_lea.vmem (%p895_p4), %s1085_s3, %s594_s16 }
 0x1de   : > { %410 = sbr.rel (!%p895_p4) target bundleno = 493 (0x1ed), region = 66 }
 0x1e3   : > { %v342_v61 = vld [vmem:[#allocation8] sm:$0x3] }
 0x1e4   : > { %344 = vst [vmem:[%s1095_s29] sm:$0x3] %v342_v61 }
 0x1eb   : > { %v430_v62 = vld [vmem:[%s1096_s25] sm:$0x3] }
 0x1ec   : > { %431 = vst [vmem:[%s414_s9] sm:$0x3] %v430_v62 }
 0x1ed PF: > { %p608_p6 = scmp.ge.s32.totalorder %s812_s19, 2  ;;  %s458_s23 = sand.u32 1, %s784_s12  }
 0x1ee   : > { %p1097_p9 = scmp.ne.s32.totalorder %s1091_s4, 0  ;;  %s459_s28 = scalar_lea.sflag [#allocation3], %s458_s23 }
 0x1f0   : > { %p604_p11 = pnand %p608_p6, %p1097_p9 }
 0x1f2   : > { %779 = dma.done.wait (!%p604_p11), %s459_s28, 32  }
 0x1f3   : > { %781 = vsyncadd (!%p604_p11), %s459_s28, 4294967264  ;;  %s16_s19 = sadd.s32 1, %s812_s19   ;;  %s1098_s20 = sld [smem:[#allocation13_spill]] }
 0x1f4   : > { %p13_p4 = scmp.ge.s32.totalorder %s16_s19, 6   ;;  %s1099_s12 = smov %s788_s13 }
 0x1f5   : > { %s1100_s13 = smov %s792_s14  ;;  %s1101_s14 = smov %s912_s7 }
 0x1f6   : > { %s1102_s15 = smov %s804_s17  ;;  %s1103_s16 = smov %s808_s18 }
 0x1f7   : > { %s1104_s17 = smov %s1107_s22  ;;  %15 = sbr.rel (!%p13_p4) target bundleno = 9 (0x9), region = 184 }
 0x1f9   : > { %s1105_s18 = smov %s1098_s20 }
 0x1fe   :  { %471 = vsyncpa [#allocation2], 1 }
 0x1ff   :  { %473 = vsyncpa [#allocation2 + $0x1], 1 }
 0x200   :  { %474 = vsyncpa [#allocation3], 1 }
 0x201   :  { %476 = vsyncpa [#allocation3 + $0x1], 1 }

// kernel: custom-call.13
= control target key start
LH: loop header
LB: loop body
LE: loop exit
PB: predicated region body
PF: predicated region fallthrough
CT: control target
= control target key end

     0   :  { %s408_s6 = smov 0   ;;  %s410_s7 = smov 0   ;;  %s477_s0 = inlined_call_operand.vmem [shape: f32[2,2,1,4,4], index: 0, kind: input, shape index: {}]   ;;  %s478_s1 = inlined_call_operand.vmem [shape: f32[2,2,1,4,4], index: 1, kind: output, shape index: {}]  }
   0x1   :  { %s412_s8 = smov 0   ;;  %s414_s9 = smov 0  }
   0x2   :  { %s416_s10 = smov 0  }
   0x3 LB: > { %s300_s11 = sadd.s32 4294967295, %s395_s10   ;;  %s36_s12 = sadd.s32 1, %s387_s8  ;;  %s395_s10 = sphi %s416_s10, %s7_s10   ;;  %s391_s9 = sphi %s414_s9, %s482_s9   ;;  %s387_s8 = sphi %s412_s8, %s481_s8   ;;  %s383_s7 = sphi %s410_s7, %s480_s7   ;;  %s379_s6 = sphi %s408_s6, %s479_s6  }
   0x4   : > { %p38_p0 = scmp.ge.s32.totalorder %s36_s12, 2  ;;  %s40_s13 = sadd.s32 1, %s391_s9 }
   0x5   : > { %p302_p2 = scmp.ge.s32.totalorder %s395_s10, 4 }
   0x6   : > { %s484_s12 = smov (%p38_p0, %s36_s12), 0  ;;  %s486_s13 = smov (!%p38_p0, %s40_s13), %s391_s9 }
   0x7   : > { %p42_p1 = scmp.ge.s32.totalorder %s486_s13, 2  ;;  %54 = sbr.rel (%p302_p2) target bundleno = 15 (0xf), region = 16 }
   0x8   : > { %s56_s14 = sand.u32 (!%p302_p2), 1, %s395_s10   ;;  %s304_s15 = sshll.u32 (!%p302_p2), %s391_s9, 1 }
   0x9   : > { %s488_s13 = smov (%p42_p1, %s486_s13), 0  ;;  %s303_s16 = sshll.u32 (!%p302_p2), %s56_s14, 2 }
   0xa   : > { %s63_s17 = sadd.s32 (!%p302_p2), %s387_s8, %s304_s15  ;;  %s58_s22 = scalar_lea.vmem (!%p302_p2), [#allocation1], %s303_s16 }
   0xb   : > { %s305_s18 = sshll.u32 (!%p302_p2), %s63_s17, 2 }
   0xc   : > { %s65_s21 = scalar_lea.vmem (!%p302_p2), %s477_s0, %s305_s18 }
   0xd   : > { %v81_v0 = vld [vmem:[%s65_s21] sm:$0xf] (!%p302_p2) }
   0xe   : > { %82 = vst [vmem:[%s58_s22] sm:$0xf] %v81_v0 }
   0xf PF: > { %p306_p3 = scmp.ge.s32.totalorder %s395_s10, 1  ;;  %p98_p4 = scmp.lt.s32.totalorder %s395_s10, 5 }
  0x11   : > { %p99_p5 = pnand %p306_p3, %p98_p4 }
  0x13   : > { %102 = sbr.rel (%p99_p5) target bundleno = 659 (0x293), region = 50 }
  0x1a   : > { %s450_s23 = sand.u32 1, %s300_s11   ;;  %v120_v1 = vlaneseq  ;;  %v397_v11 = vmov -1.0   ;;  %s310_s26 = sshll.u32 %s383_s7, 1 }
  0x1b   : > { %s307_s24 = sshll.u32 %s450_s23, 2  ;;  %s197_s27 = sadd.s32 %s379_s6, %s310_s26 }
  0x1c   : > { %s111_s25 = scalar_lea.vmem [#allocation1], %s307_s24  ;;  %v121_v3 = vand.u32 127, %v120_v1  ;;  %v124_v4 = vshrl.u32 %v120_v1, 7  ;;  %s115_s28 = scalar_lea.vmem [#allocation3], %s307_s24 }
  0x1d   : > { %v118_v2 = vld [vmem:[%s111_s25] sm:$0xf]  ;;  %s311_s29 = sshll.u32 %s197_s27, 2 }
  0x1e   : > { %119 = vst [vmem:[#allocation0] sm:$0xf] %v118_v2  ;;  %vm122_vm0 = vcmp.lt.s32.totalorder %v121_v3, 4  ;;  %vm131_vm1 = vcmp.ge.s32.totalorder %v124_v4, %v121_v3  ;;  %vm126_vm2 = vcmp.eq.s32.totalorder %v124_v4, %v121_v3  ;;  %vm145_vm4 = vcmp.eq.s32.totalorder %v121_v3, 0  ;;  %s199_s3 = scalar_lea.vmem %s478_s1, %s311_s29 }
  0x1f   : > { %vm132_vm3 = vmand %vm131_vm1, %vm122_vm0  ;;  %vm142_vm5 = vcmp.eq.s32.totalorder %v121_v3, %v124_v4  ;;  %v146_v12 = vsel %vm145_vm4, 1.0, %v397_v11  ;;  %vm153_vm6 = vcmp.eq.s32.totalorder %v121_v3, 1  ;;  %vm163_vm7 = vcmp.eq.s32.totalorder %v121_v3, 2 }
  0x20   : > { %v147_v13 = vsel %vm142_vm5, %v146_v12, 0.0  ;;  %vm173_vm8 = vcmp.eq.s32.totalorder %v121_v3, 3 }
  0x25   : > { %v127_v5 = vld [vmem:[#allocation0] sm:$0xff] }
  0x26   : > { %v128_v6 = vsel %vm126_vm2, %v127_v5, 0.0  ;;  %v133_v7 = vsel %vm132_vm3, %v127_v5, 0.0 }
  0x27   : > { %129 = vadd.xlane.f32.xlu0 %v128_v6 }
  0xb4   : > { %v130_v8 = vpop.xlane.xlu0 %129 }
  0xb5   : > { %355 = vrcp.f32 %v130_v8  ;;  %vm180_vm9 = vweird.f32 %v130_v8 }
  0xbf   : > { %v356_v9 = vpop.eup %355 }
  0xc0   : > { %v135_v10 = vmul.f32 %v356_v9, %v133_v7 }
  0xc2   : > { %136 = vst [vmem:[#allocation4] sm:$0xff] %v135_v10 }
  0xc9   : > { %v149_v14 = vld [vmem:[#allocation4 + $0x1] ss:$0 sm:$0xff]  ;;  %v159_v17 = vld [vmem:[#allocation4 + $0x2] ss:$0 sm:$0xff]  ;;  %v169_v22 = vld [vmem:[#allocation4 + $0x3] ss:$0 sm:$0xff] }
  0xca   : > { %v150_v15 = vxor.u32 2147483648, %v149_v14  ;;  %v160_v19 = vxor.u32 2147483648, %v159_v17  ;;  %v170_v24 = vxor.u32 2147483648, %v169_v22 }
  0xcc   : > { %v154_v16 = vmul.f32 %v150_v15, %v147_v13 }
  0xce   : > { %155 = vadd.xlane.f32.xlu0 %v154_v16 }
 0x15b   : > { %v156_v18 = vpop.xlane.xlu0 %155 }
 0x15c   : > { %v157_v20 = vsel %vm153_vm6, %v156_v18, %v147_v13 }
 0x15d   : > { %v164_v21 = vmul.f32 %v160_v19, %v157_v20 }
 0x15f   : > { %165 = vadd.xlane.f32.xlu1 %v164_v21 }
 0x1ec   : > { %v166_v23 = vpop.xlane.xlu1 %165 }
 0x1ed   : > { %v167_v25 = vsel %vm163_vm7, %v166_v23, %v157_v20 }
 0x1ee   : > { %v174_v26 = vmul.f32 %v170_v24, %v167_v25 }
 0x1f0   : > { %175 = vadd.xlane.f32.xlu1 %v174_v26 }
 0x27d   : > { %v176_v27 = vpop.xlane.xlu1 %175 }
 0x27e   : > { %v177_v28 = vsel %vm173_vm8, %v176_v27, %v167_v25 }
 0x27f   : > { %v179_v29 = vmul.f32 %v356_v9, %v177_v28 }
 0x281   : > { %v181_v30 = vsel %vm180_vm9, %v177_v28, %v179_v29 }
 0x282   : > { %182 = vst [vmem:[#allocation2] sm:$0xff] %v181_v30 }
 0x289   : > { %v186_v31 = vld [vmem:[#allocation2] sm:$0xf] }
 0x28a   : > { %188 = vst [vmem:[%s115_s28] sm:$0xf] %v186_v31 }
 0x291   : > { %v215_v32 = vld [vmem:[%s115_s28] sm:$0xf] }
 0x292   : > { %216 = vst [vmem:[%s199_s3] sm:$0xf] %v215_v32 }
 0x293 PF: > { %s7_s10 = sadd.s32 1, %s395_s10   ;;  %s479_s6 = smov %s387_s8 }
 0x294   : > { %p4_p6 = scmp.ge.s32.totalorder %s7_s10, 6   ;;  %s480_s7 = smov %s391_s9 }
 0x295   : > { %s481_s8 = smov %s484_s12  ;;  %s482_s9 = smov %s488_s13 }
 0x296   :  { %6 = sbr.rel (!%p4_p6) target bundleno = 3 (0x3), region = 113 }

// kernel: custom-call.12
= control target key start
LH: loop header
LB: loop body
LE: loop exit
PB: predicated region body
PF: predicated region fallthrough
CT: control target
= control target key end

     0   :  { %s407_s6 = smov 0   ;;  %s409_s7 = smov 0   ;;  %s476_s0 = inlined_call_operand.vmem [shape: f32[2,2,1,4,4], index: 0, kind: input, shape index: {}]   ;;  %s477_s1 = inlined_call_operand.vmem [shape: f32[2,2,1,4,4], index: 1, kind: output, shape index: {}]  }
   0x1   :  { %s411_s8 = smov 0   ;;  %s413_s9 = smov 0  }
   0x2   :  { %s415_s10 = smov 0  }
   0x3 LB: > { %s299_s11 = sadd.s32 4294967295, %s394_s10   ;;  %s36_s12 = sadd.s32 1, %s386_s8  ;;  %s394_s10 = sphi %s415_s10, %s7_s10   ;;  %s390_s9 = sphi %s413_s9, %s481_s9   ;;  %s386_s8 = sphi %s411_s8, %s480_s8   ;;  %s382_s7 = sphi %s409_s7, %s479_s7   ;;  %s378_s6 = sphi %s407_s6, %s478_s6  }
   0x4   : > { %p38_p0 = scmp.ge.s32.totalorder %s36_s12, 2  ;;  %s40_s13 = sadd.s32 1, %s390_s9 }
   0x5   : > { %p301_p2 = scmp.ge.s32.totalorder %s394_s10, 4 }
   0x6   : > { %s483_s12 = smov (%p38_p0, %s36_s12), 0  ;;  %s485_s13 = smov (!%p38_p0, %s40_s13), %s390_s9 }
   0x7   : > { %p42_p1 = scmp.ge.s32.totalorder %s485_s13, 2  ;;  %54 = sbr.rel (%p301_p2) target bundleno = 15 (0xf), region = 16 }
   0x8   : > { %s56_s14 = sand.u32 (!%p301_p2), 1, %s394_s10   ;;  %s303_s15 = sshll.u32 (!%p301_p2), %s390_s9, 1 }
   0x9   : > { %s487_s13 = smov (%p42_p1, %s485_s13), 0  ;;  %s302_s16 = sshll.u32 (!%p301_p2), %s56_s14, 2 }
   0xa   : > { %s63_s17 = sadd.s32 (!%p301_p2), %s386_s8, %s303_s15  ;;  %s58_s22 = scalar_lea.vmem (!%p301_p2), [#allocation1], %s302_s16 }
   0xb   : > { %s304_s18 = sshll.u32 (!%p301_p2), %s63_s17, 2 }
   0xc   : > { %s65_s21 = scalar_lea.vmem (!%p301_p2), %s476_s0, %s304_s18 }
   0xd   : > { %v81_v0 = vld [vmem:[%s65_s21] sm:$0xf] (!%p301_p2) }
   0xe   : > { %82 = vst [vmem:[%s58_s22] sm:$0xf] %v81_v0 }
   0xf PF: > { %p305_p3 = scmp.ge.s32.totalorder %s394_s10, 1  ;;  %p98_p4 = scmp.lt.s32.totalorder %s394_s10, 5 }
  0x11   : > { %p99_p5 = pnand %p305_p3, %p98_p4 }
  0x13   : > { %102 = sbr.rel (%p99_p5) target bundleno = 659 (0x293), region = 50 }
  0x1a   : > { %s449_s23 = sand.u32 1, %s299_s11   ;;  %v120_v1 = vlaneseq  ;;  %v396_v11 = vmov -1.0   ;;  %s309_s26 = sshll.u32 %s382_s7, 1 }
  0x1b   : > { %s306_s24 = sshll.u32 %s449_s23, 2  ;;  %s196_s27 = sadd.s32 %s378_s6, %s309_s26 }
  0x1c   : > { %s111_s25 = scalar_lea.vmem [#allocation1], %s306_s24  ;;  %v121_v3 = vand.u32 127, %v120_v1  ;;  %v124_v4 = vshrl.u32 %v120_v1, 7  ;;  %s115_s28 = scalar_lea.vmem [#allocation3], %s306_s24 }
  0x1d   : > { %v118_v2 = vld [vmem:[%s111_s25] sm:$0xf]  ;;  %s310_s29 = sshll.u32 %s196_s27, 2 }
  0x1e   : > { %119 = vst [vmem:[#allocation0] sm:$0xf] %v118_v2  ;;  %vm122_vm0 = vcmp.lt.s32.totalorder %v121_v3, 4  ;;  %vm131_vm1 = vcmp.le.s32.totalorder %v124_v4, %v121_v3  ;;  %vm126_vm2 = vcmp.eq.s32.totalorder %v124_v4, %v121_v3  ;;  %vm145_vm4 = vcmp.eq.s32.totalorder %v121_v3, 3  ;;  %s198_s3 = scalar_lea.vmem %s477_s1, %s310_s29 }
  0x1f   : > { %vm132_vm3 = vmand %vm131_vm1, %vm122_vm0  ;;  %vm142_vm5 = vcmp.eq.s32.totalorder %v121_v3, %v124_v4  ;;  %v146_v12 = vsel %vm145_vm4, 1.0, %v396_v11  ;;  %vm153_vm6 = vcmp.eq.s32.totalorder %v121_v3, 2  ;;  %vm163_vm7 = vcmp.eq.s32.totalorder %v121_v3, 1 }
  0x20   : > { %v147_v13 = vsel %vm142_vm5, %v146_v12, 0.0  ;;  %vm172_vm8 = vcmp.eq.s32.totalorder %v121_v3, 0 }
  0x25   : > { %v127_v5 = vld [vmem:[#allocation0] sm:$0xff] }
  0x26   : > { %v128_v6 = vsel %vm126_vm2, %v127_v5, 0.0  ;;  %v133_v7 = vsel %vm132_vm3, %v127_v5, 0.0 }
  0x27   : > { %129 = vadd.xlane.f32.xlu0 %v128_v6 }
  0xb4   : > { %v130_v8 = vpop.xlane.xlu0 %129 }
  0xb5   : > { %354 = vrcp.f32 %v130_v8  ;;  %vm179_vm9 = vweird.f32 %v130_v8 }
  0xbf   : > { %v355_v9 = vpop.eup %354 }
  0xc0   : > { %v135_v10 = vmul.f32 %v355_v9, %v133_v7 }
  0xc2   : > { %136 = vst [vmem:[#allocation4] sm:$0xff] %v135_v10 }
  0xc9   : > { %v149_v14 = vld [vmem:[#allocation4 + $0x2] ss:$0 sm:$0xff]  ;;  %v159_v17 = vld [vmem:[#allocation4 + $0x1] ss:$0 sm:$0xff]  ;;  %v168_v22 = vld [vmem:[#allocation4] ss:$0 sm:$0xff] }
  0xca   : > { %v150_v15 = vxor.u32 2147483648, %v149_v14  ;;  %v160_v19 = vxor.u32 2147483648, %v159_v17  ;;  %v169_v24 = vxor.u32 2147483648, %v168_v22 }
  0xcc   : > { %v154_v16 = vmul.f32 %v150_v15, %v147_v13 }
  0xce   : > { %155 = vadd.xlane.f32.xlu0 %v154_v16 }
 0x15b   : > { %v156_v18 = vpop.xlane.xlu0 %155 }
 0x15c   : > { %v157_v20 = vsel %vm153_vm6, %v156_v18, %v147_v13 }
 0x15d   : > { %v164_v21 = vmul.f32 %v160_v19, %v157_v20 }
 0x15f   : > { %165 = vadd.xlane.f32.xlu1 %v164_v21 }
 0x1ec   : > { %v166_v23 = vpop.xlane.xlu1 %165 }
 0x1ed   : > { %v167_v25 = vsel %vm163_vm7, %v166_v23, %v157_v20 }
 0x1ee   : > { %v173_v26 = vmul.f32 %v169_v24, %v167_v25 }
 0x1f0   : > { %174 = vadd.xlane.f32.xlu1 %v173_v26 }
 0x27d   : > { %v175_v27 = vpop.xlane.xlu1 %174 }
 0x27e   : > { %v176_v28 = vsel %vm172_vm8, %v175_v27, %v167_v25 }
 0x27f   : > { %v178_v29 = vmul.f32 %v355_v9, %v176_v28 }
 0x281   : > { %v180_v30 = vsel %vm179_vm9, %v176_v28, %v178_v29 }
 0x282   : > { %181 = vst [vmem:[#allocation2] sm:$0xff] %v180_v30 }
 0x289   : > { %v185_v31 = vld [vmem:[#allocation2] sm:$0xf] }
 0x28a   : > { %187 = vst [vmem:[%s115_s28] sm:$0xf] %v185_v31 }
 0x291   : > { %v214_v32 = vld [vmem:[%s115_s28] sm:$0xf] }
 0x292   : > { %215 = vst [vmem:[%s198_s3] sm:$0xf] %v214_v32 }
 0x293 PF: > { %s7_s10 = sadd.s32 1, %s394_s10   ;;  %s478_s6 = smov %s386_s8 }
 0x294   : > { %p4_p6 = scmp.ge.s32.totalorder %s7_s10, 6   ;;  %s479_s7 = smov %s390_s9 }
 0x295   : > { %s480_s8 = smov %s483_s12  ;;  %s481_s9 = smov %s487_s13 }
 0x296   :  { %6 = sbr.rel (!%p4_p6) target bundleno = 3 (0x3), region = 112 }

// kernel: _lambda_.1
= control target key start
LH: loop header
LB: loop body
LE: loop exit
PB: predicated region body
PF: predicated region fallthrough
CT: control target
= control target key end

     0   :  { %s2637_s21 = smov 0   ;;  %s2639_s22 = smov 0   ;;  %s3127_s0 = inlined_call_operand.vmem [shape: f32[4,3,128], index: 0, kind: input, shape index: {}]   ;;  %s3128_s1 = inlined_call_operand.vmem [shape: f32[3,128], index: 1, kind: input, shape index: {}]   ;;  %s3129_s2 = inlined_call_operand.vmem [shape: f32[4,48,3], index: 2, kind: input, shape index: {}]   ;;  %s3130_s3 = inlined_call_operand.vmem [shape: f32[49,3], index: 3, kind: input, shape index: {}]   ;;  %s3131_s4 = inlined_call_operand.vmem [shape: f32[49,1], index: 4, kind: input, shape index: {}]   ;;  %s3132_s5 = inlined_call_operand.vmem [shape: f32[4,32,128], index: 5, kind: output, shape index: {0}]   ;;  %s3133_s6 = inlined_call_operand.vmem [shape: f32[4,16,128], index: 6, kind: output, shape index: {1}]  }
   0x1   :  { %s2641_s23 = smov 0  }
   0x2 LB: > { %s29_s24 = sadd.s32 1, %s2593_s22  ;;  %p2127_p0 = scmp.ge.s32.totalorder %s2597_s23, 1  ;;  %s2597_s23 = sphi %s2641_s23, %s17_s23   ;;  %s2593_s22 = sphi %s2639_s22, %s3135_s22   ;;  %s2589_s21 = sphi %s2637_s21, %s3134_s21  }
   0x3   : > { %p31_p1 = scmp.ge.s32.totalorder %s29_s24, 4  ;;  %p254_p2 = scmp.lt.s32.totalorder %s2597_s23, 5 }
   0x5   : > { %s3137_s24 = smov (%p31_p1, %s29_s24), 0  ;;  %p255_p3 = pnand %p2127_p0, %p254_p2 }
   0x6   : > { %p306_p4 = scmp.lt.s32.totalorder (!%p255_p3), %s2589_s21, 3  ;;  %v2599_v0 = vmov (!%p255_p3), 0.0   ;;  %vm2600_vm0 = vmmov (!%p255_p3), 0   ;;  %v339_v1 = vld [vmem:[%s3130_s3] sm:$0xff] (!%p255_p3)  ;;  %vm388_vm1 = vcmask (!%p255_p3), 23552   ;;  %v340_v2 = vld [vmem:[%s3130_s3 + $0x8] sm:$0xff] (!%p255_p3) }
   0x7   : > { %258 = sbr.rel (%p255_p3) target bundleno = 453 (0x1c5), region = 40  ;;  %2229 = vmatprep.subr.mxu1 (!%p255_p3), %v2599_v0  ;;  %2231 = vmatprep.mubr.msk.f32.mxu1 (!%p255_p3), %vm2600_vm0, %v2599_v0  ;;  %v341_v3 = vld [vmem:[%s3130_s3 + $0x10] sm:$0xff] (!%p255_p3)  ;;  %v390_v4 = vsel (!%p255_p3), %vm388_vm1, %v339_v1, 0  ;;  %v393_v5 = vsel (!%p255_p3), %vm388_vm1, %v340_v2, 0  ;;  %v342_v7 = vld [vmem:[%s3130_s3 + $0x18] sm:$0xff] (!%p255_p3)  ;;  %v343_v12 = vld [vmem:[%s3130_s3 + $0x20] sm:$0xff] (!%p255_p3) }
   0x8   : > { %2252 = vmatprep.subr.mxu0 (!%p255_p3), %v2599_v0  ;;  %2254 = vmatprep.mubr.msk.f32.mxu0 (!%p255_p3), %vm2600_vm0, %v2599_v0  ;;  %v396_v6 = vsel (!%p255_p3), %vm388_vm1, %v341_v3, 0  ;;  %v2678_v8 = vand.u32 (!%p255_p3), 4294901760, %v390_v4  ;;  %v2680_v9 = vand.u32 (!%p255_p3), 4294901760, %v393_v5  ;;  %v399_v11 = vsel (!%p255_p3), %vm388_vm1, %v342_v7, 0  ;;  %v344_v18 = vld [vmem:[%s3130_s3 + $0x28] sm:$0xff] (!%p255_p3)  ;;  %v350_v56 = vld [vmem:[%s3131_s4 + $0x20] sm:$0xff] (!%p255_p3) }
   0x9   : > { %v2682_v10 = vand.u32 (!%p255_p3), 4294901760, %v396_v6  ;;  %vm410_vm2 = vcmask (!%p255_p3), 1042432   ;;  %v2689_v13 = vand.u32 (!%p255_p3), 4294901760, %v399_v11  ;;  %v402_v17 = vsel (!%p255_p3), %vm388_vm1, %v343_v12, 0  ;;  %v345_v32 = vld [vmem:[%s3130_s3 + $0x30] sm:$0x1] (!%p255_p3) }
   0xa   : > { %v2695_v14 = vsub.f32 (!%p255_p3), %v390_v4, %v2678_v8  ;;  %v2698_v15 = vsub.f32 (!%p255_p3), %v393_v5, %v2680_v9  ;;  %v2712_v24 = vand.u32 (!%p255_p3), 4294901760, %v402_v17  ;;  %v405_v25 = vsel (!%p255_p3), %vm388_vm1, %v344_v18, 0  ;;  %v1134_v35 = vld [vmem:[%s3128_s1] sm:$0x7] (!%p255_p3)  ;;  %v352_v54 = vld [vmem:[%s3131_s4 + $0x30] sm:$0x1] (!%p255_p3) }
   0xb   : > { %v2701_v16 = vsub.f32 (!%p255_p3), %v396_v6, %v2682_v10  ;;  %v2723_v29 = vsub.f32 (!%p255_p3), %v399_v11, %v2689_v13  ;;  %v2734_v34 = vand.u32 (!%p255_p3), 4294901760, %v405_v25  ;;  %v408_v41 = vsel (!%p255_p3), %vm388_vm1, %v345_v32, 0  ;;  %v346_v61 = vld [vmem:[%s3131_s4] sm:$0xff] (!%p255_p3)  ;;  %v351_v62 = vld [vmem:[%s3131_s4 + $0x28] sm:$0xff] (!%p255_p3)  ;;  %v348_v3 = vld [vmem:[%s3131_s4 + $0x10] sm:$0xff] (!%p255_p3) }
   0xc   : > { %v482_v21 = vand.u32 (!%p255_p3), 4294901760, %v2695_v14  ;;  %v492_v22 = vand.u32 (!%p255_p3), 4294901760, %v2698_v15  ;;  %v2744_v39 = vsub.f32 (!%p255_p3), %v402_v17, %v2712_v24  ;;  %v1154_v42 = vsel (!%p255_p3), %vm410_vm2, %v1134_v35, 0  ;;  %v347_v5 = vld [vmem:[%s3131_s4 + $0x8] sm:$0xff] (!%p255_p3)  ;;  %v349_v18 = vld [vmem:[%s3131_s4 + $0x18] sm:$0xff] (!%p255_p3) }
   0xd   : > { %v502_v28 = vand.u32 (!%p255_p3), 4294901760, %v2701_v16  ;;  %v512_v38 = vand.u32 (!%p255_p3), 4294901760, %v2723_v29  ;;  %v2754_v44 = vsub.f32 (!%p255_p3), %v405_v25, %v2734_v34  ;;  %v2760_v48 = vand.u32 (!%p255_p3), 4294901760, %v408_v41 }
   0xe   : > { %s3139_s21 = smov (!%p306_p4, %s2589_s21), 3  ;;  %v483_v26 = vsub.f32 %v2695_v14, %v482_v21  ;;  %v493_v27 = vsub.f32 %v2698_v15, %v492_v22  ;;  %v522_v47 = vand.u32 4294901760, %v2744_v39  ;;  %v2764_v49 = vand.u32 4294901760, %v1154_v42 }
   0xf   : > { %s2128_s11 = sshll.u32 %s3139_s21, 2  ;;  %v503_v37 = vsub.f32 %v2701_v16, %v502_v28  ;;  %v513_v46 = vsub.f32 %v2723_v29, %v512_v38  ;;  %v532_v50 = vand.u32 4294901760, %v2754_v44  ;;  %v2777_v53 = vsub.f32 %v408_v41, %v2760_v48  ;;  %s2535_s29 = smul.u32 48, %s3139_s21 }
  0x10   : > { %s312_s14 = scalar_lea.vmem %s3127_s0, %s2128_s11  ;;  %v484_v31 = vand.u32 4294901760, %v483_v26  ;;  %v494_v36 = vand.u32 4294901760, %v493_v27  ;;  %v523_v52 = vsub.f32 %v2744_v39, %v522_v47  ;;  %v2601_v55 = vmov 0   ;;  %s2137_s19 = sshll.u32 %s3139_s21, 5 }
  0x11   : > { %v338_v19 = vld [vmem:[%s312_s14] sm:$0x7]  ;;  %v504_v45 = vand.u32 4294901760, %v503_v37  ;;  %v514_v51 = vand.u32 4294901760, %v513_v46  ;;  %2564 = vset.pattern.permute.xlu1 %v2601_v55  ;;  %v533_v58 = vsub.f32 %v2754_v44, %v532_v50  ;;  %v542_v59 = vand.u32 4294901760, %v2777_v53  ;;  %2563 = vset.pattern.permute.xlu0 %v2601_v55  ;;  %s2818_s12 = scalar_lea.vmem %s3129_s2, %s2535_s29  ;;  %s329_s26 = scalar_lea.vmem %s3132_s5, %s2137_s19 }
  0x12   : > { %v412_v20 = vsel %vm410_vm2, %v338_v19, 0  ;;  %v524_v57 = vand.u32 4294901760, %v523_v52  ;;  %385 = vperm.xlu1 %2564, %v352_v54   ;;  %v2800_v60 = vsub.f32 %v1154_v42, %v2764_v49  ;;  %375 = vperm.xlu0 %2563, %v350_v56   ;;  %v1128_v4 = vld [vmem:[%s2818_s12] sm:$0xff]  ;;  %v1129_v11 = vld [vmem:[%s2818_s12 + $0x8] sm:$0xff]  ;;  %v1130_v17 = vld [vmem:[%s2818_s12 + $0x10] sm:$0xff]  ;;  %vm1950_vm3 = vcmask 1040384  }
  0x13   : > { %v2710_v23 = vand.u32 4294901760, %v412_v20  ;;  %v534_v63 = vand.u32 4294901760, %v533_v58  ;;  %v543_v1 = vsub.f32 %v2777_v53, %v542_v59  ;;  %v1136_v7 = vsel %vm388_vm1, %v1128_v4, 0  ;;  %v1131_v26 = vld [vmem:[%s2818_s12 + $0x18] sm:$0xff]  ;;  %v1133_v41 = vld [vmem:[%s2818_s12 + $0x28] sm:$0xff]  ;;  %s2138_s27 = sshll.u32 %s3139_s21, 4 }
  0x14   : > { %v2824_v2 = vand.u32 4294901760, %v2800_v60  ;;  %v2850_v19 = vand.u32 4294901760, %v1136_v7  ;;  %v1142_v25 = vsel %vm388_vm1, %v1130_v17, 0  ;;  %v1145_v37 = vsel %vm388_vm1, %v1131_v26, 0  ;;  %s337_s30 = scalar_lea.vmem %s3133_s6, %s2138_s27 }
  0x15   : > { %2230 = vmatpush3.msra.mxu1 %v2710_v23  ;;  %v2727_v30 = vsub.f32 %v412_v20, %v2710_v23  ;;  %v544_v6 = vand.u32 4294901760, %v543_v1  ;;  %v1139_v20 = vsel %vm388_vm1, %v1129_v11, 0  ;;  %v1151_v52 = vsel %vm388_vm1, %v1133_v41, 0 }
  0x16   : > { %2433 = vmatprep.subr.mxu1 %v2599_v0  ;;  %2232 = vmatmul.mubr.f32.vlgmr.msra.gmra.mrb[0].mxu1 %v484_v31  ;;  %v1286_v12 = vsub.f32 %v2800_v60, %v2824_v2  ;;  %v1132_v31 = vld [vmem:[%s2818_s12 + $0x20] sm:$0xff]  ;;  %v2860_v32 = vand.u32 4294901760, %v1139_v20  ;;  %v2866_v35 = vsub.f32 %v1136_v7, %v2850_v19  ;;  %v2899_v56 = vand.u32 4294901760, %v1151_v52 }
  0x17   : > { %v553_v33 = vand.u32 4294901760, %v2727_v30  ;;  %2234 = vmatprep.mubr.msk.f32.mxu1 %vm2600_vm0, %v2599_v0  ;;  %355 = vperm.xlu1 %2564, %v346_v61   ;;  %vm1952_vm4 = vcmask 1041408   ;;  %vm1955_vm5 = vcmask 1043456   ;;  %vm1957_vm6 = vcmask 1044480  }
  0x18   : > { %380 = vperm.xlu0 %2563, %v351_v62   ;;  %v1287_v27 = vand.u32 4294901760, %v1286_v12  ;;  %v2878_v42 = vsub.f32 %v1139_v20, %v2860_v32  ;;  %v2919_v1 = vsub.f32 %v1151_v52, %v2899_v56  ;;  %vm1959_vm7 = vcmask 1045504  }
  0x19   : > { %v554_v40 = vsub.f32 %v2727_v30, %v553_v33  ;;  %vm1961_vm8 = vcmask 1046528  }
  0x1a   : > { %2235 = vmatmul.mubr.f32.gmra.mrb[2].mxu1 %v494_v36  ;;  %v2868_v36 = vand.u32 4294901760, %v1142_v25  ;;  %v1234_v54 = vand.u32 4294901760, %v2878_v42  ;;  %v1274_v11 = vand.u32 4294901760, %v2919_v1 }
  0x1b   : > { %v555_v43 = vand.u32 4294901760, %v554_v40  ;;  %2237 = vmatprep.mubr.msk.f32.mxu1 %vm2600_vm0, %v2599_v0  ;;  %365 = vperm.xlu1 %2564, %v348_v3   ;;  %v1148_v40 = vsel %vm388_vm1, %v1132_v31, 0 }
  0x1c   : > { %360 = vperm.xlu0 %2563, %v347_v5   ;;  %v2886_v46 = vsub.f32 %v1142_v25, %v2868_v36  ;;  %v1235_v62 = vsub.f32 %v2878_v42, %v1234_v54 }
  0x1d   : > { %2253 = vmatpush3.msra.mxu0 %v555_v43  ;;  %2434 = vmatpush3.msra.mxu1 %v555_v43  ;;  %v2880_v43 = vand.u32 4294901760, %v1145_v37 }
  0x1e   : > { %2255 = vmatmul.mubr.f32.vlgmr.msra.gmra.mrb[0].mxu0 %v2678_v8  ;;  %2275 = vmatprep.subr.mxu0 %v2599_v0  ;;  %v1244_v58 = vand.u32 4294901760, %v2886_v46 }
  0x1f   : > { %2276 = vmatpush3.msra.mxu0 %v2727_v30  ;;  %2257 = vmatprep.mubr.msk.f32.mxu0 %vm2600_vm0, %v2599_v0  ;;  %v2897_v55 = vsub.f32 %v1145_v37, %v2880_v43 }
  0x20   : > { %2238 = vmatmul.mubr.f32.gmra.mrb[4].mxu1 %v504_v45  ;;  %2298 = vmatprep.subr.mxu0 %v2599_v0  ;;  %v1224_v45 = vand.u32 4294901760, %v2866_v35  ;;  %v1245_v4 = vsub.f32 %v2886_v46, %v1244_v58 }
  0x21   : > { %2240 = vmatprep.mubr.msk.f32.mxu1 %vm2600_vm0, %v2599_v0  ;;  %2367 = vmatprep.subr.mxu1 %v2764_v49 }
  0x22   : > { %2258 = vmatmul.mubr.f32.gmra.mrb[2].mxu0 %v2680_v9  ;;  %370 = vperm.xlu0 %2563, %v349_v18  }
  0x23   : > { %2277 = vmatprep.mubr.msk.f32.mxu0 %vm2600_vm0, %v2599_v0 }
  0x24   : > { %2241 = vmatmul.mubr.f32.gmra.mrb[6].mxu1 %v514_v51  ;;  %v2888_v51 = vand.u32 4294901760, %v1148_v40 }
  0x25   : > { %2243 = vmatprep.mubr.msk.f32.mxu1 %vm2600_vm0, %v2599_v0 }
  0x26   : > { %2278 = vmatmul.mubr.f32.vlgmr.msra.gmra.mrb[0].mxu0 %v2695_v14  ;;  %v2908_v61 = vsub.f32 %v1148_v40, %v2888_v51  ;;  %v1246_v14 = vand.u32 4294901760, %v1245_v4 }
  0x27   : > { %2299 = vmatpush3.msra.mxu0 %v2710_v23  ;;  %2280 = vmatprep.mubr.msk.f32.mxu0 %vm2600_vm0, %v2599_v0 }
  0x28   : > { %2244 = vmatmul.mubr.f32.gmra.mrb[8].mxu1 %v524_v57  ;;  %2321 = vmatprep.subr.mxu0 %v2599_v0  ;;  %v1225_v57 = vsub.f32 %v2866_v35, %v1224_v45  ;;  %v1264_v5 = vand.u32 4294901760, %v2908_v61 }
  0x29   : > { %2246 = vmatprep.mubr.msk.f32.mxu1 %vm2600_vm0, %v2599_v0 }
  0x2a   : > { %2281 = vmatmul.mubr.f32.gmra.mrb[2].mxu0 %v2698_v15  ;;  %v1226_v3 = vand.u32 4294901760, %v1225_v57 }
  0x2b   : > { %2283 = vmatprep.mubr.msk.f32.mxu0 %vm2600_vm0, %v2599_v0 }
  0x2c   : > { %2247 = vmatmul.mubr.f32.gmra.mrb[10].mxu1 %v534_v63  ;;  %v1254_v63 = vand.u32 4294901760, %v2897_v55 }
  0x2d   : > { %2249 = vmatprep.mubr.msk.f32.mxu1 %vm2600_vm0, %v2599_v0 }
  0x2e   : > { %2284 = vmatmul.mubr.f32.gmra.mrb[4].mxu0 %v2701_v16  ;;  %v1255_v7 = vsub.f32 %v2897_v55, %v1254_v63 }
  0x2f   : > { %2286 = vmatprep.mubr.msk.f32.mxu0 %vm2600_vm0, %v2599_v0 }
  0x30   : > { %2250 = vmatmul.mubr.f32.gmra.mrb[12].mxu1 %v544_v6  ;;  %v1236_v6 = vand.u32 4294901760, %v1235_v62  ;;  %v1256_v30 = vand.u32 4294901760, %v1255_v7 }
  0x31   : > { %2260 = vmatprep.mubr.msk.f32.mxu1 %vm2600_vm0, %v2599_v0 }
  0x32   : > { %2287 = vmatmul.mubr.f32.gmra.mrb[6].mxu0 %v2723_v29 }
  0x33   : > { %2289 = vmatprep.mubr.msk.f32.mxu0 %vm2600_vm0, %v2599_v0 }
  0x34   : > { %2261 = vmatmul.mubr.f32.vlgmr.msra.gmra.mrb[4].mxu1 %v2682_v10 }
  0x35   : > { %2263 = vmatprep.mubr.msk.f32.mxu1 %vm2600_vm0, %v2599_v0  ;;  %2368 = vmatpush3.msra.mxu1 %v2764_v49 }
  0x36   : > { %2290 = vmatmul.mubr.f32.gmra.mrb[8].mxu0 %v2744_v39  ;;  %2378 = vmatprep.subr.mxu1 %v1287_v27 }
  0x37   : > { %2292 = vmatprep.mubr.msk.f32.mxu0 %vm2600_vm0, %v2599_v0 }
  0x38   : > { %2264 = vmatmul.mubr.f32.gmra.mrb[6].mxu1 %v2689_v13 }
  0x39   : > { %2266 = vmatprep.mubr.msk.f32.mxu1 %vm2600_vm0, %v2599_v0 }
  0x3a   : > { %2293 = vmatmul.mubr.f32.gmra.mrb[10].mxu0 %v2754_v44 }
  0x3b   : > { %2295 = vmatprep.mubr.msk.f32.mxu0 %vm2600_vm0, %v2599_v0 }
  0x3c   : > { %2267 = vmatmul.mubr.f32.gmra.mrb[8].mxu1 %v2712_v24 }
  0x3d   : > { %2269 = vmatprep.mubr.msk.f32.mxu1 %vm2600_vm0, %v2599_v0 }
  0x3e   : > { %2296 = vmatmul.mubr.f32.gmra.mrb[12].mxu0 %v2777_v53 }
  0x3f   : > { %2300 = vmatprep.mubr.msk.f32.mxu0 %vm2600_vm0, %v2599_v0 }
  0x40   : > { %2270 = vmatmul.mubr.f32.gmra.mrb[10].mxu1 %v2734_v34 }
  0x41   : > { %2272 = vmatprep.mubr.msk.f32.mxu1 %vm2600_vm0, %v2599_v0 }
  0x42   : > { %2301 = vmatmul.mubr.f32.vlgmr.msra.gmra.mrb[0].mxu0 %v482_v21  ;;  %v1265_v21 = vsub.f32 %v2908_v61, %v1264_v5 }
  0x43   : > { %2322 = vmatpush3.msra.mxu0 %v553_v33  ;;  %2303 = vmatprep.mubr.msk.f32.mxu0 %vm2600_vm0, %v2599_v0  ;;  %v1275_v33 = vsub.f32 %v2919_v1, %v1274_v11 }
  0x44   : > { %2273 = vmatmul.mubr.f32.gmra.mrb[12].mxu1 %v2760_v48  ;;  %2344 = vmatprep.subr.mxu0 %v2599_v0  ;;  %v1266_v12 = vand.u32 4294901760, %v1265_v21 }
  0x45   : > { %2369 = vmatprep.mubr.f32.mxu1 %v1226_v3  ;;  %v1276_v15 = vand.u32 4294901760, %v1275_v33 }
  0x46   : > { %2304 = vmatmul.mubr.f32.gmra.mrb[2].mxu0 %v492_v22 }
  0x47   : > { %2306 = vmatprep.mubr.msk.f32.mxu0 %vm2600_vm0, %v2599_v0 }
  0x48   : > { %2370 = vmatmul.mubr.f32.vlgmr.msra.gmra.mrb[14].mxu1 %v1236_v6 }
  0x49   : > { %2372 = vmatprep.mubr.f32.mxu1 %v1246_v14  ;;  %2379 = vmatpush3.msra.mxu1 %v1287_v27 }
  0x4a   : > { %2307 = vmatmul.mubr.f32.gmra.mrb[4].mxu0 %v502_v28  ;;  %2389 = vmatprep.subr.mxu1 %v2800_v60 }
  0x4b   : > { %2309 = vmatprep.mubr.msk.f32.mxu0 %vm2600_vm0, %v2599_v0 }
  0x4c   : > { %2373 = vmatmul.mubr.f32.gmra.mrb[16].mxu1 %v1256_v30 }
  0x4d   : > { %2375 = vmatprep.mubr.f32.mxu1 %v1266_v12 }
  0x4e   : > { %2310 = vmatmul.mubr.f32.gmra.mrb[6].mxu0 %v512_v38 }
  0x4f   : > { %2312 = vmatprep.mubr.msk.f32.mxu0 %vm2600_vm0, %v2599_v0 }
  0x50   : > { %2376 = vmatmul.mubr.f32.gmra.mrb[18].mxu1 %v1276_v15 }
  0x51   : > { %2380 = vmatprep.mubr.f32.mxu1 %v2850_v19 }
  0x52   : > { %2313 = vmatmul.mubr.f32.gmra.mrb[8].mxu0 %v522_v47 }
  0x53   : > { %2315 = vmatprep.mubr.msk.f32.mxu0 %vm2600_vm0, %v2599_v0 }
  0x54   : > { %2381 = vmatmul.mubr.f32.vlgmr.msra.gmra.mrb[14].mxu1 %v2860_v32 }
  0x55   : > { %2383 = vmatprep.mubr.f32.mxu1 %v2868_v36  ;;  %2390 = vmatpush3.msra.mxu1 %v2800_v60 }
  0x56   : > { %2316 = vmatmul.mubr.f32.gmra.mrb[10].mxu0 %v532_v50  ;;  %2400 = vmatprep.subr.mxu1 %v2764_v49 }
  0x57   : > { %2318 = vmatprep.mubr.msk.f32.mxu0 %vm2600_vm0, %v2599_v0 }
  0x58   : > { %2384 = vmatmul.mubr.f32.gmra.mrb[16].mxu1 %v2880_v43 }
  0x59   : > { %2386 = vmatprep.mubr.f32.mxu1 %v2888_v51 }
  0x5a   : > { %2319 = vmatmul.mubr.f32.gmra.mrb[12].mxu0 %v542_v59 }
  0x5b   : > { %2323 = vmatprep.mubr.msk.f32.mxu0 %vm2600_vm0, %v2599_v0 }
  0x5c   : > { %2387 = vmatmul.mubr.f32.gmra.mrb[18].mxu1 %v2899_v56 }
  0x5d   : > { %2391 = vmatprep.mubr.f32.mxu1 %v2866_v35 }
  0x5e   : > { %2324 = vmatmul.mubr.f32.vlgmr.msra.gmra.mrb[0].mxu0 %v2678_v8 }
  0x5f   : > { %2345 = vmatpush3.msra.mxu0 %v2710_v23  ;;  %2326 = vmatprep.mubr.msk.f32.mxu0 %vm2600_vm0, %v2599_v0 }
  0x60   : > { %2392 = vmatmul.mubr.f32.vlgmr.msra.gmra.mrb[14].mxu1 %v2878_v42 }
  0x61   : > { %2394 = vmatprep.mubr.f32.mxu1 %v2886_v46  ;;  %2401 = vmatpush3.msra.mxu1 %v2764_v49 }
  0x62   : > { %2327 = vmatmul.mubr.f32.gmra.mrb[2].mxu0 %v2680_v9  ;;  %2411 = vmatprep.subr.mxu1 %v2824_v2 }
  0x63   : > { %2329 = vmatprep.mubr.msk.f32.mxu0 %vm2600_vm0, %v2599_v0 }
  0x64   : > { %2395 = vmatmul.mubr.f32.gmra.mrb[16].mxu1 %v2897_v55 }
  0x65   : > { %2397 = vmatprep.mubr.f32.mxu1 %v2908_v61 }
  0x66   : > { %2330 = vmatmul.mubr.f32.gmra.mrb[4].mxu0 %v2682_v10 }
  0x67   : > { %2332 = vmatprep.mubr.msk.f32.mxu0 %vm2600_vm0, %v2599_v0 }
  0x68   : > { %2398 = vmatmul.mubr.f32.gmra.mrb[18].mxu1 %v2919_v1 }
  0x69   : > { %2402 = vmatprep.mubr.f32.mxu1 %v1224_v45 }
  0x6a   : > { %2333 = vmatmul.mubr.f32.gmra.mrb[6].mxu0 %v2689_v13 }
  0x6b   : > { %2335 = vmatprep.mubr.msk.f32.mxu0 %vm2600_vm0, %v2599_v0 }
  0x6c   : > { %2403 = vmatmul.mubr.f32.vlgmr.msra.gmra.mrb[14].mxu1 %v1234_v54 }
  0x6d   : > { %2405 = vmatprep.mubr.f32.mxu1 %v1244_v58  ;;  %2412 = vmatpush3.msra.mxu1 %v2824_v2 }
  0x6e   : > { %2336 = vmatmul.mubr.f32.gmra.mrb[8].mxu0 %v2712_v24  ;;  %2422 = vmatprep.subr.mxu1 %v2764_v49 }
  0x6f   : > { %2338 = vmatprep.mubr.msk.f32.mxu0 %vm2600_vm0, %v2599_v0 }
  0x70   : > { %2406 = vmatmul.mubr.f32.gmra.mrb[16].mxu1 %v1254_v63 }
  0x71   : > { %2408 = vmatprep.mubr.f32.mxu1 %v1264_v5 }
  0x72   : > { %2339 = vmatmul.mubr.f32.gmra.mrb[10].mxu0 %v2734_v34 }
  0x73   : > { %2341 = vmatprep.mubr.msk.f32.mxu0 %vm2600_vm0, %v2599_v0 }
  0x74   : > { %2409 = vmatmul.mubr.f32.gmra.mrb[18].mxu1 %v1274_v11 }
  0x75   : > { %2413 = vmatprep.mubr.f32.mxu1 %v2850_v19 }
  0x76   : > { %2342 = vmatmul.mubr.f32.gmra.mrb[12].mxu0 %v2760_v48 }
  0x77   : > { %2346 = vmatprep.mubr.msk.f32.mxu0 %vm2600_vm0, %v2599_v0 }
  0x78   : > { %2414 = vmatmul.mubr.f32.vlgmr.msra.gmra.mrb[14].mxu1 %v2860_v32 }
  0x79   : > { %2416 = vmatprep.mubr.f32.mxu1 %v2868_v36  ;;  %2423 = vmatpush3.msra.mxu1 %v2764_v49 }
  0x7a   : > { %2347 = vmatmul.mubr.f32.vlgmr.msra.gmra.mrb[0].mxu0 %v2678_v8 }
  0x7b   : > { %2349 = vmatprep.mubr.msk.f32.mxu0 %vm2600_vm0, %v2599_v0 }
  0x7c   : > { %2417 = vmatmul.mubr.f32.gmra.mrb[16].mxu1 %v2880_v43 }
  0x7d   : > { %2419 = vmatprep.mubr.f32.mxu1 %v2888_v51 }
  0x7e   : > { %2350 = vmatmul.mubr.f32.gmra.mrb[2].mxu0 %v2680_v9 }
  0x7f   : > { %2352 = vmatprep.mubr.msk.f32.mxu0 %vm2600_vm0, %v2599_v0 }
  0x80   : > { %2420 = vmatmul.mubr.f32.gmra.mrb[18].mxu1 %v2899_v56 }
  0x81   : > { %2424 = vmatprep.mubr.f32.mxu1 %v2850_v19 }
  0x82   : > { %2353 = vmatmul.mubr.f32.gmra.mrb[4].mxu0 %v2682_v10 }
  0x83   : > { %2355 = vmatprep.mubr.msk.f32.mxu0 %vm2600_vm0, %v2599_v0 }
  0x84   : > { %2425 = vmatmul.mubr.f32.vlgmr.msra.gmra.mrb[14].mxu1 %v2860_v32 }
  0x85   : > { %2427 = vmatprep.mubr.f32.mxu1 %v2868_v36 }
  0x86   : > { %2356 = vmatmul.mubr.f32.gmra.mrb[6].mxu0 %v2689_v13 }
  0x87   : > { %2358 = vmatprep.mubr.msk.f32.mxu0 %vm2600_vm0, %v2599_v0 }
  0x88   : > { %2428 = vmatmul.mubr.f32.gmra.mrb[16].mxu1 %v2880_v43 }
  0x89   : > { %2430 = vmatprep.mubr.f32.mxu1 %v2888_v51 }
  0x8a   : > { %2359 = vmatmul.mubr.f32.gmra.mrb[8].mxu0 %v2712_v24 }
  0x8b   : > { %2361 = vmatprep.mubr.msk.f32.mxu0 %vm2600_vm0, %v2599_v0 }
  0x8c   : > { %2431 = vmatmul.mubr.f32.gmra.mrb[18].mxu1 %v2899_v56 }
  0x8e   : > { %2362 = vmatmul.mubr.f32.gmra.mrb[10].mxu0 %v2734_v34 }
  0x8f   : > { %2364 = vmatprep.mubr.msk.f32.mxu0 %vm2600_vm0, %v2599_v0 }
  0x91   : > { %v376_v47 = vpop.permute.xlu0 %375  ;;  %v386_v49 = vpop.permute.xlu1 %385 }
  0x92   : > { %2365 = vmatmul.mubr.f32.gmra.mrb[12].mxu0 %v2760_v48 }
  0x96   : > { %v356_v50 = vpop.permute.xlu1 %355 }
  0x97   : > { %v381_v0 = vpop.permute.xlu0 %380 }
  0x9a   : > { %v366_v18 = vpop.permute.xlu1 %365 }
  0x9b   : > { %v361_v53 = vpop.permute.xlu0 %360 }
  0xa1   : > { %v371_v27 = vpop.permute.xlu0 %370 }
  0xe9   : > { %v486_v8 = vpop.f32.mrb[0].mxu1 }
  0xea   : > { %v2233_v9 = vpop.f32.mrb[1].mxu1  ;;  %v487_v48 = vadd.f32 %v486_v8, %v356_v50 }
  0xed   : > { %v496_v10 = vpop.f32.mrb[2].mxu1 }
  0xee   : > { %v2236_v13 = vpop.f32.mrb[3].mxu1  ;;  %v497_v17 = vadd.f32 %v496_v10, %v361_v53 }
 0x107   : > { %v634_v16 = vpop.f32.mrb[4].mxu1 }
 0x108   : > { %v2262_v22 = vpop.f32.mrb[5].mxu1  ;;  %v2439_v26 = vadd.f32 %v634_v16, %v366_v18 }
 0x10b   : > { %v640_v23 = vpop.f32.mrb[6].mxu1 }
 0x10c   : > { %v2265_v24 = vpop.f32.mrb[7].mxu1  ;;  %v2441_v37 = vadd.f32 %v640_v23, %v371_v27 }
 0x10f   : > { %v646_v28 = vpop.f32.mrb[8].mxu1 }
 0x110   : > { %v2268_v29 = vpop.f32.mrb[9].mxu1  ;;  %v2443_v46 = vadd.f32 %v646_v28, %v376_v47 }
 0x113   : > { %v652_v38 = vpop.f32.mrb[10].mxu1 }
 0x114   : > { %v2271_v39 = vpop.f32.mrb[11].mxu1  ;;  %v2445_v57 = vadd.f32 %v652_v38, %v381_v0 }
 0x117   : > { %v658_v44 = vpop.f32.mrb[12].mxu1 }
 0x118   : > { %v2274_v34 = vpop.f32.mrb[13].mxu1  ;;  %v2447_v1 = vadd.f32 %v658_v44, %v386_v49 }
 0x14d   : > { %v1078_v59 = vpop.f32.mrb[0].mxu0 }
 0x14e   : > { %v2436_v60 = vadd.f32 %v1078_v59, %v487_v48  ;;  %v2348_v2 = vpop.f32.mrb[1].mxu0 }
 0x150   : > { %1124 = vst [vmem:[%s329_s26] sm:$0xff] %v2436_v60 }
 0x151   : > { %v1084_v19 = vpop.f32.mrb[2].mxu0 }
 0x152   : > { %v2438_v20 = vadd.f32 %v1084_v19, %v497_v17  ;;  %v2351_v25 = vpop.f32.mrb[3].mxu0 }
 0x154   : > { %1125 = vst [vmem:[%s329_s26 + $0x8] sm:$0xff] %v2438_v20 }
 0x155   : > { %v1090_v31 = vpop.f32.mrb[4].mxu0 }
 0x156   : > { %v2440_v32 = vadd.f32 %v2439_v26, %v1090_v31  ;;  %v2354_v35 = vpop.f32.mrb[5].mxu0 }
 0x157   : > { %v3058_v36 = vpop.f32.mrb[14].mxu1 }
 0x158   : > { %1126 = vst [vmem:[%s329_s26 + $0x10] sm:$0xff] %v2440_v32  ;;  %v3060_v40 = vpop.f32.mrb[15].mxu1 }
 0x159   : > { %v1096_v41 = vpop.f32.mrb[6].mxu0 }
 0x15a   : > { %v2442_v42 = vadd.f32 %v2441_v37, %v1096_v41  ;;  %v2357_v43 = vpop.f32.mrb[7].mxu0 }
 0x15b   : > { %v3062_v45 = vpop.f32.mrb[16].mxu1 }
 0x15c   : > { %1127 = vst [vmem:[%s329_s26 + $0x18] sm:$0xff] %v2442_v42  ;;  %v3064_v51 = vpop.f32.mrb[17].mxu1 }
 0x15d   : > { %v1102_v52 = vpop.f32.mrb[8].mxu0 }
 0x15e   : > { %v2444_v54 = vadd.f32 %v2443_v46, %v1102_v52  ;;  %v2360_v55 = vpop.f32.mrb[9].mxu0 }
 0x15f   : > { %v3066_v56 = vpop.f32.mrb[18].mxu1 }
 0x160   : > { %v3068_v58 = vpop.f32.mrb[19].mxu1 }
 0x161   : > { %v1108_v61 = vpop.f32.mrb[10].mxu0 }
 0x162   : > { %v2446_v62 = vadd.f32 %v2445_v57, %v1108_v61  ;;  %v2363_v63 = vpop.f32.mrb[11].mxu0 }
 0x164   : > { %v1817_v3 = vmax.f32 %v2444_v54, %v2446_v62 }
 0x165   : > { %v1114_v4 = vpop.f32.mrb[12].mxu0 }
 0x166   : > { %v1818_v5 = vrot.slane %v1817_v3, 4  ;;  %v2448_v6 = vadd.f32 %v2447_v1, %v1114_v4  ;;  %v2366_v7 = vpop.f32.mrb[13].mxu0 }
 0x168   : > { %v1819_v11 = vmax.f32 %v1817_v3, %v1818_v5  ;;  %v2134_v31 = vmul.f32 -1.442695, %v2448_v6 }
 0x16a   : > { %v1820_v14 = vrot.slane %v1819_v11, 2 }
 0x16c   : > { %v1821_v21 = vmax.f32 %v1819_v11, %v1820_v14 }
 0x16e   : > { %v1822_v30 = vrot.slane %v1821_v21, 1 }
 0x170   : > { %v1823_v33 = vmax.f32 %v1821_v21, %v1822_v30 }
 0x172   : > { %v1824_v12 = vsub.f32 %v2444_v54, %v1823_v33  ;;  %v1825_v15 = vsub.f32 %v2446_v62, %v1823_v33 }
 0x174   : > { %v1826_v8 = vmul.f32 1.442695, %v1824_v12  ;;  %v1828_v9 = vmul.f32 1.442695, %v1825_v15 }
 0x176   : > { %2565 = vpow2.f32 %v1826_v8 }
 0x177   : > { %2567 = vpow2.f32 %v1828_v9 }
 0x180   : > { %v3070_v10 = vpop.eup %2565 }
 0x181   : > { %v3072_v13 = vpop.eup %2567  ;;  %v1844_v16 = vmul.f32 %v3070_v10, %v3060_v40  ;;  %v1854_v22 = vmul.f32 %v3070_v10, %v3064_v51  ;;  %v1864_v23 = vmul.f32 %v3070_v10, %v3068_v58 }
 0x182   : > { %v1830_v24 = vadd.f32 %v3072_v13, %v3070_v10  ;;  %v1845_v28 = vmul.f32 %v3072_v13, %v3058_v36  ;;  %v1855_v29 = vmul.f32 %v3072_v13, %v3062_v45  ;;  %v1865_v38 = vmul.f32 %v3072_v13, %v3066_v56 }
 0x184   : > { %v1831_v39 = vrot.slane %v1830_v24, 4  ;;  %v1846_v44 = vadd.f32 %v1845_v28, %v1844_v16  ;;  %v1856_v34 = vadd.f32 %v1855_v29, %v1854_v22  ;;  %v1866_v47 = vadd.f32 %v1865_v38, %v1864_v23 }
 0x186   : > { %v1832_v49 = vadd.f32 %v1831_v39, %v1830_v24  ;;  %v1847_v59 = vrot.slane %v1846_v44, 4  ;;  %v1857_v60 = vrot.slane %v1856_v34, 4  ;;  %v1867_v2 = vrot.slane %v1866_v47, 4 }
 0x188   : > { %v1833_v0 = vrot.slane %v1832_v49, 2  ;;  %v1848_v17 = vadd.f32 %v1847_v59, %v1846_v44  ;;  %v1858_v18 = vadd.f32 %v1857_v60, %v1856_v34  ;;  %v1868_v19 = vadd.f32 %v1867_v2, %v1866_v47 }
 0x18a   : > { %v1834_v50 = vadd.f32 %v1833_v0, %v1832_v49  ;;  %v1849_v20 = vrot.slane %v1848_v17, 2  ;;  %v1859_v25 = vrot.slane %v1858_v18, 2  ;;  %v1869_v26 = vrot.slane %v1868_v19, 2 }
 0x18c   : > { %v1835_v48 = vrot.slane %v1834_v50, 1  ;;  %v1850_v37 = vadd.f32 %v1849_v20, %v1848_v17  ;;  %v1860_v41 = vadd.f32 %v1859_v25, %v1858_v18  ;;  %v1870_v42 = vadd.f32 %v1869_v26, %v1868_v19 }
 0x18e   : > { %v1836_v53 = vadd.f32 %v1835_v48, %v1834_v50  ;;  %v1851_v52 = vrot.slane %v1850_v37, 1  ;;  %v1861_v54 = vrot.slane %v1860_v41, 1  ;;  %v1871_v55 = vrot.slane %v1870_v42, 1 }
 0x190   : > { %2569 = vrcp.f32 %v1836_v53  ;;  %v1852_v62 = vadd.f32 %v1851_v52, %v1850_v37  ;;  %v1862_v63 = vadd.f32 %v1861_v54, %v1860_v41  ;;  %v1872_v1 = vadd.f32 %v1871_v55, %v1870_v42 }
 0x191   : > { %2571 = vpow2.f32 %v2134_v31 }
 0x19a   : > { %v2570_v27 = vpop.eup %2569 }
 0x19b   : > { %v1838_v32 = vmul.f32 %v2570_v27, %v1836_v53  ;;  %v2572_v6 = vpop.eup %2571 }
 0x19c   : > { %v1121_v16 = vadd.f32 1.0, %v2572_v6 }
 0x19d   : > { %v1839_v35 = vsub.f32 2.0, %v1838_v32 }
 0x19e   : > { %2573 = vrcp.f32 %v1121_v16 }
 0x19f   : > { %v1840_v43 = vmul.f32 %v2570_v27, %v1839_v35 }
 0x1a1   : > { %v1841_v46 = vmul.f32 %v1840_v43, %v1836_v53 }
 0x1a3   : > { %v1842_v57 = vsub.f32 2.0, %v1841_v46 }
 0x1a5   : > { %v3088_v61 = vmul.f32 %v1842_v57, %v1840_v43 }
 0x1a7   : > { %v1853_v3 = vmul.f32 %v1852_v62, %v3088_v61  ;;  %v1863_v4 = vmul.f32 %v1862_v63, %v3088_v61  ;;  %v1873_v5 = vmul.f32 %v1872_v1, %v3088_v61 }
 0x1a9   : > { %v1874_v7 = vsub.f32 %v1853_v3, %v3060_v40  ;;  %v1875_v11 = vsub.f32 %v1853_v3, %v3058_v36  ;;  %v1876_v14 = vsub.f32 %v1863_v4, %v3064_v51  ;;  %v1877_v21 = vsub.f32 %v1863_v4, %v3062_v45 }
 0x1aa   : > { %v1878_v30 = vsub.f32 %v1873_v5, %v3068_v58  ;;  %v1879_v33 = vsub.f32 %v1873_v5, %v3066_v56  ;;  %v1951_v12 = vsel %vm1950_vm3, %v1853_v3, %v1863_v4 }
 0x1ab   : > { %v1880_v15 = vmul.f32 %v3070_v10, %v1874_v7  ;;  %v1881_v8 = vmul.f32 %v3072_v13, %v1875_v11  ;;  %v1882_v9 = vmul.f32 %v3070_v10, %v1876_v14  ;;  %v1883_v40 = vmul.f32 %v3072_v13, %v1877_v21 }
 0x1ac   : > { %v1884_v36 = vmul.f32 %v3070_v10, %v1878_v30  ;;  %v1885_v51 = vmul.f32 %v3072_v13, %v1879_v33  ;;  %v3107_v45 = vsel %vm1952_vm4, %v1951_v12, %v1873_v5  ;;  %v1886_v5 = vmul.f32 0.11111111, %v3088_v61 }
 0x1ad   : > { %v1887_v58 = vmul.f32 %v1880_v15, %v1874_v7  ;;  %v1888_v56 = vmul.f32 %v1881_v8, %v1875_v11  ;;  %v1897_v22 = vmul.f32 %v1880_v15, %v1876_v14  ;;  %v1898_v23 = vmul.f32 %v1881_v8, %v1877_v21 }
 0x1ae   : > { %v1907_v24 = vmul.f32 %v1880_v15, %v1878_v30  ;;  %v1908_v28 = vmul.f32 %v1881_v8, %v1879_v33  ;;  %v1917_v29 = vmul.f32 %v1882_v9, %v1876_v14  ;;  %v1918_v38 = vmul.f32 %v1883_v40, %v1877_v21 }
 0x1af   : > { %v1889_v39 = vadd.f32 %v1888_v56, %v1887_v58  ;;  %v1899_v44 = vadd.f32 %v1898_v23, %v1897_v22  ;;  %v1927_v34 = vmul.f32 %v1882_v9, %v1878_v30  ;;  %v1928_v47 = vmul.f32 %v1883_v40, %v1879_v33 }
 0x1b0   : > { %v1909_v49 = vadd.f32 %v1908_v28, %v1907_v24  ;;  %v1919_v0 = vadd.f32 %v1918_v38, %v1917_v29  ;;  %v1937_v10 = vmul.f32 %v1884_v36, %v1878_v30  ;;  %v1938_v50 = vmul.f32 %v1885_v51, %v1879_v33  ;;  %v2574_v33 = vpop.eup %2573 }
 0x1b1   : > { %v1890_v13 = vrot.slane %v1889_v39, 4  ;;  %v1900_v48 = vrot.slane %v1899_v44, 4  ;;  %v1929_v53 = vadd.f32 %v1928_v47, %v1927_v34  ;;  %v1948_v58 = vrot.slane %v2574_v33, 7 }
 0x1b2   : > { %v1910_v59 = vrot.slane %v1909_v49, 4  ;;  %v1920_v60 = vrot.slane %v1919_v0, 4  ;;  %v1939_v2 = vadd.f32 %v1938_v50, %v1937_v10 }
 0x1b3   : > { %v1891_v17 = vadd.f32 %v1890_v13, %v1889_v39  ;;  %v1901_v18 = vadd.f32 %v1900_v48, %v1899_v44  ;;  %v1930_v19 = vrot.slane %v1929_v53, 4 }
 0x1b4   : > { %v1911_v20 = vadd.f32 %v1910_v59, %v1909_v49  ;;  %v1921_v25 = vadd.f32 %v1920_v60, %v1919_v0  ;;  %v1940_v26 = vrot.slane %v1939_v2, 4 }
 0x1b5   : > { %v1892_v27 = vrot.slane %v1891_v17, 2  ;;  %v1902_v31 = vrot.slane %v1901_v18, 2  ;;  %v1931_v32 = vadd.f32 %v1930_v19, %v1929_v53 }
 0x1b6   : > { %v1912_v35 = vrot.slane %v1911_v20, 2  ;;  %v1922_v37 = vrot.slane %v1921_v25, 2  ;;  %v1941_v41 = vadd.f32 %v1940_v26, %v1939_v2 }
 0x1b7   : > { %v1893_v42 = vadd.f32 %v1892_v27, %v1891_v17  ;;  %v1903_v43 = vadd.f32 %v1902_v31, %v1901_v18  ;;  %v1932_v46 = vrot.slane %v1931_v32, 2 }
 0x1b8   : > { %v1913_v52 = vadd.f32 %v1912_v35, %v1911_v20  ;;  %v1923_v54 = vadd.f32 %v1922_v37, %v1921_v25  ;;  %v1942_v55 = vrot.slane %v1941_v41, 2 }
 0x1b9   : > { %v1894_v57 = vrot.slane %v1893_v42, 1  ;;  %v1904_v62 = vrot.slane %v1903_v43, 1  ;;  %v1933_v63 = vadd.f32 %v1932_v46, %v1931_v32 }
 0x1ba   : > { %v1914_v1 = vrot.slane %v1913_v52, 1  ;;  %v1924_v3 = vrot.slane %v1923_v54, 1  ;;  %v1943_v4 = vadd.f32 %v1942_v55, %v1941_v41 }
 0x1bb   : > { %v1895_v6 = vadd.f32 %v1894_v57, %v1893_v42  ;;  %v1905_v7 = vadd.f32 %v1904_v62, %v1903_v43  ;;  %v1934_v11 = vrot.slane %v1933_v63, 1 }
 0x1bc   : > { %v1915_v14 = vadd.f32 %v1914_v1, %v1913_v52  ;;  %v1925_v21 = vadd.f32 %v1924_v3, %v1923_v54  ;;  %v1944_v30 = vrot.slane %v1943_v4, 1 }
 0x1bd   : > { %v1896_v12 = vmul.f32 %v1895_v6, %v1886_v5  ;;  %v1906_v15 = vmul.f32 %v1905_v7, %v1886_v5  ;;  %v1935_v8 = vadd.f32 %v1934_v11, %v1933_v63 }
 0x1be   : > { %v1916_v9 = vmul.f32 %v1915_v14, %v1886_v5  ;;  %v1926_v40 = vmul.f32 %v1925_v21, %v1886_v5  ;;  %v1945_v16 = vadd.f32 %v1944_v30, %v1943_v4 }
 0x1bf   : > { %v1936_v36 = vmul.f32 %v1935_v8, %v1886_v5  ;;  %v1954_v61 = vsel %vm410_vm2, %v3107_v45, %v1896_v12 }
 0x1c0   : > { %v1946_v51 = vmul.f32 %v1945_v16, %v1886_v5  ;;  %v1956_v56 = vsel %vm1955_vm5, %v1954_v61, %v1906_v15 }
 0x1c1   : > { %v1958_v22 = vsel %vm1957_vm6, %v1956_v56, %v1916_v9 }
 0x1c2   : > { %v1960_v23 = vsel %vm1959_vm7, %v1958_v22, %v1926_v40  ;;  %v1963_v24 = vsel %vm1950_vm3, %v1946_v51, %v1948_v58 }
 0x1c3   : > { %v1962_v28 = vsel %vm1961_vm8, %v1960_v23, %v1936_v36  ;;  %v1964_v29 = vsel %vm1952_vm4, %v1963_v24, 0.0 }
 0x1c4   : > { %1965 = vst [vmem:[%s337_s30] sm:$0xff] %v1962_v28  ;;  %1966 = vst [vmem:[%s337_s30 + $0x8] sm:$0xff] %v1964_v29 }
 0x1c5 PF: > { %s17_s23 = sadd.s32 1, %s2597_s23   ;;  %s3134_s21 = smov %s2593_s22 }
 0x1c6   : > { %p14_p5 = scmp.ge.s32.totalorder %s17_s23, 6   ;;  %s3135_s22 = smov %s3137_s24 }
 0x1c8   :  { %16 = sbr.rel (!%p14_p5) target bundleno = 2 (0x2), region = 88 }

</bundles_post_ra>
